<compile_context>
chip_gen: v5e
topology: v5e:2x2
jax: 0.10.0
libtpu: 0.0.40
codegen_flags: <defaults>
</compile_context>

<pallas_src>
import jax
import jax.numpy as jnp
from jax.experimental import pallas as pl
from jax.experimental.pallas import tpu as pltpu

IN_FEATURES = 64 * 9 * 9   # 5184
H1, H2, H3, OUT = 128, 64, 32, 1
BN_EPS = 1e-5


def _bn_relu(h, gamma, beta):
    """Training-mode BatchNorm1d (biased variance, eps=1e-5) + ReLU, in f32."""
    mean = jnp.mean(h, axis=0, keepdims=True)
    var = jnp.mean((h - mean) * (h - mean), axis=0, keepdims=True)
    h = (h - mean) * jax.lax.rsqrt(var + BN_EPS) * gamma + beta
    return jnp.maximum(h, 0.0)


def _make_kernel(tail_valid):
    """Build the kernel.  tail_valid = number of valid K columns in the LAST
    x/w1 chunk, or None when every chunk is fully in-bounds (no masking)."""

    def kernel(x_ref, w1_ref, g1_ref, be1_ref,
               w2_ref, g2_ref, be2_ref,
               w3_ref, g3_ref, be3_ref,
               w4_ref, b4_ref,
               out_ref, h1_acc):
        k = pl.program_id(0)
        nk = pl.num_programs(0)

        # Layer-1 partial K contraction.  x arrives as f32 straight from HBM;
        # cast to bf16 right before the MXU dot (no wrapper pre-pass).
        xk = x_ref[...]
        if tail_valid is not None:
            # The final chunk reads past the end of x (unspecified lanes);
            # zero them so they contribute nothing to the contraction.
            col = jax.lax.broadcasted_iota(jnp.int32, xk.shape, 1)
            limit = jnp.where(k == nk - 1, tail_valid, xk.shape[1])
            xk = jnp.where(col < limit, xk, 0.0)
        partial = jnp.dot(xk.astype(jnp.bfloat16), w1_ref[...],
                          preferred_element_type=jnp.float32)

        @pl.when(k == 0)
        def _():
            h1_acc[...] = partial          # first step: write, don't zero+add

        @pl.when(k > 0)
        def _():
            h1_acc[...] += partial

        @pl.when(k == nk - 1)
        def _():
            # b1/b2/b3 omitted: training-mode BN subtracts the batch mean, so
            # a pre-BN bias cancels exactly.
            h = _bn_relu(h1_acc[...], g1_ref[...], be1_ref[...])

            h = jnp.dot(h.astype(jnp.bfloat16), w2_ref[...],
                        preferred_element_type=jnp.float32)
            h = _bn_relu(h, g2_ref[...], be2_ref[...])

            h = jnp.dot(h.astype(jnp.bfloat16), w3_ref[...],
                        preferred_element_type=jnp.float32)
            h = _bn_relu(h, g3_ref[...], be3_ref[...])

            out_ref[...] = (
                jnp.dot(h.astype(jnp.bfloat16), w4_ref[...],
                        preferred_element_type=jnp.float32)
                + b4_ref[...]
            )

    return kernel


def _vmem_budget_bytes():
    """Usable VMEM budget for this chip (keep headroom below physical VMEM)."""
    cap = 64 << 20                      # v7x is the smallest; safe default
    try:
        cap = int(getattr(pltpu.get_tpu_info(), "vmem_capacity_bytes", cap))
    except Exception:
        pass
    # ~56 MiB on v7x (64 MiB physical), ~100 MiB on v5e/v6e (128 MiB physical).
    return int(min(cap - (8 << 20), 100 << 20))


def prepare_params(params):
    """One-time conversion of the static weights to MXU-native bf16.
    Call once and reuse so the per-call path has no weight cast/pad traffic."""
    prep = dict(params)
    for name in ("w1", "w2", "w3", "w4"):
        prep[name] = params[name].astype(jnp.bfloat16)
    return prep


def discriminator_office(x, prep, *, k_tile=None):
    """x: (N, 5184) float32 -> (N, 1) float32.  Training-mode BN semantics.
    `prep` should come from prepare_params() (bf16 weights).
    `k_tile` forces the K-tiled path (multiple of 128); mainly for testing."""
    N, K = x.shape
    assert K == IN_FEATURES, K

    w1 = prep["w1"].astype(jnp.bfloat16)   # no-ops if already prepared
    w2 = prep["w2"].astype(jnp.bfloat16)
    w3 = prep["w3"].astype(jnp.bfloat16)
    w4 = prep["w4"].astype(jnp.bfloat16)

    budget = _vmem_budget_bytes()
    small_bytes = 2 * ((H1 * H2 + H2 * H3 + H3 * OUT) * 2
                       + (2 * H1 + 2 * H2 + 2 * H3 + OUT) * 4)
    fixed = N * H1 * 4 + 2 * N * OUT * 4 + small_bytes   # acc + out + params

    # Single full-K step (no padding, no per-step overhead) whenever the
    # double-buffered f32 x block fits in VMEM; otherwise K-tile with the
    # largest lane-aligned chunk the budget allows.
    single_ws = fixed + 2 * N * K * 4 + 2 * K * H1 * 2
    if k_tile is None and single_ws <= budget:
        tk, n_k, tail = K, 1, None
        working_set = single_ws
        w1_k = w1                                    # full-dim block, no pad
    else:
        if k_tile is not None:
            tk = int(k_tile)
        else:
            per_tk = 2 * N * 4 + 2 * H1 * 2          # x f32 + w1 bf16, 2 bufs
            tk = ((budget - fixed) // per_tk) // 128 * 128
            tk = int(max(128, min(tk, pl.cdiv(K, 128) * 128)))
        assert tk % 128 == 0, tk
        n_k = pl.cdiv(K, tk)
        kp = n_k * tk
        tail = K - (n_k - 1) * tk
        tail = None if tail == tk else tail
        working_set = fixed + 2 * N * tk * 4 + 2 * tk * H1 * 2
        # Zero-pad w1 rows to the tiled K extent so the (masked-to-zero) x
        # tail never meets non-finite garbage.  Static weight; for repeated
        # large-N use pre-pad it once alongside prepare_params().
        w1_k = w1 if w1.shape[0] >= kp else jnp.pad(w1, ((0, kp - K), (0, 0)))

    args = (x, w1_k,
            prep["g1"], prep["be1"],
            w2, prep["g2"], prep["be2"],
            w3, prep["g3"], prep["be3"],
            w4, prep["b4"])

    in_specs = [
        pl.BlockSpec((N, tk), lambda k: (0, k)),     # x: K-chunked (f32)
        pl.BlockSpec((tk, H1), lambda k: (k, 0)),    # w1: K-chunked (bf16)
    ] + [
        pl.BlockSpec(a.shape, lambda k, _nd=a.ndim: (0,) * _nd)
        for a in args[2:]                            # small params: resident
    ]

    # Exact working set (double buffers already counted) + headroom, clamped
    # to the per-generation budget — no spurious extra 2x.
    vmem_limit = int(min(max(working_set + max(working_set // 4, 2 << 20),
                             4 << 20), budget))

    flops = 2 * N * (K * H1 + H1 * H2 + H2 * H3 + H3 * OUT)
    bytes_accessed = (
        N * K * 4 + n_k * tk * H1 * 2
        + (H1 * H2 + H2 * H3 + H3 * OUT) * 2
        + (2 * H1 + 2 * H2 + 2 * H3 + OUT) * 4
        + N * OUT * 4
    )

    return pl.pallas_call(
        _make_kernel(tail),
        out_shape=jax.ShapeDtypeStruct((N, OUT), jnp.float32),
        grid_spec=pltpu.PrefetchScalarGridSpec(
            num_scalar_prefetch=0,
            grid=(n_k,),
            in_specs=in_specs,
            out_specs=pl.BlockSpec((N, OUT), lambda k: (0, 0)),
            scratch_shapes=[pltpu.VMEM((N, H1), jnp.float32)],
        ),
        compiler_params=pltpu.CompilerParams(
            dimension_semantics=("arbitrary",),   # K is a reduction axis
            vmem_limit_bytes=vmem_limit,
        ),
        cost_estimate=pl.CostEstimate(
            flops=flops,
            transcendentals=H1 + H2 + H3,         # rsqrt per BN feature
            bytes_accessed=bytes_accessed,
        ),
    )(*args)


def init_params(key):
    """PyTorch-default init:
    Linear: weight, bias ~ U(-1/sqrt(fan_in), 1/sqrt(fan_in))
    BatchNorm1d: gamma = 1, beta = 0.
    Biases / BN params stored as (1, C) rows for TPU lane layout."""
    dims = [(IN_FEATURES, H1), (H1, H2), (H2, H3), (H3, OUT)]
    params = {}
    keys = jax.random.split(key, 2 * len(dims))
    for i, (fan_in, fan_out) in enumerate(dims):
        bound = 1.0 / jnp.sqrt(jnp.float32(fan_in))
        params[f"w{i + 1}"] = jax.random.uniform(
            keys[2 * i], (fan_in, fan_out), jnp.float32, minval=-bound, maxval=bound
        )
        params[f"b{i + 1}"] = jax.random.uniform(
            keys[2 * i + 1], (1, fan_out), jnp.float32, minval=-bound, maxval=bound
        )
        if i < 3:  # BN after the first three linears
            params[f"g{i + 1}"] = jnp.ones((1, fan_out), jnp.float32)
            params[f"be{i + 1}"] = jnp.zeros((1, fan_out), jnp.float32)
    return params


def _reference(x, params, matmul_dtype=jnp.float32):
    """Pure-JAX reference (full PyTorch semantics, incl. the pre-BN biases).
    matmul_dtype=jnp.bfloat16 mirrors the kernel's matmul input precision."""
    h = x
    for i in range(1, 4):
        h = jnp.dot(
            h.astype(matmul_dtype), params[f"w{i}"].astype(matmul_dtype),
            preferred_element_type=jnp.float32,
        ) + params[f"b{i}"]
        mean = jnp.mean(h, axis=0, keepdims=True)
        var = jnp.mean((h - mean) ** 2, axis=0, keepdims=True)
        h = (h - mean) / jnp.sqrt(var + BN_EPS) * params[f"g{i}"] + params[f"be{i}"]
        h = jnp.maximum(h, 0.0)
    return jnp.dot(
        h.astype(matmul_dtype), params["w4"].astype(matmul_dtype),
        preferred_element_type=jnp.float32,
    ) + params["b4"]


if __name__ == "__main__":
    key = jax.random.PRNGKey(0)
    k_param, k_x = jax.random.split(key)

    N = 8  # small batch (>1 required by training-mode BatchNorm semantics)
    params = init_params(k_param)
    prep = prepare_params(params)      # one-time bf16 weight conversion
    x = jax.random.normal(k_x, (N, IN_FEATURES), jnp.float32)

    # Fast path: single full-K grid step, no padding.
    out = jax.block_until_ready(discriminator_office(x, prep))
    assert out.shape == (N, OUT), out.shape

    ref_bf16 = _reference(x, params, jnp.bfloat16)
    ref_f32 = _reference(x, params, jnp.float32)

    err_kernel = jnp.linalg.norm(out - ref_bf16) / jnp.maximum(
        jnp.linalg.norm(ref_bf16), 1e-3)
    assert err_kernel < 2e-2, err_kernel

    err_sem = jnp.linalg.norm(out - ref_f32) / jnp.maximum(
        jnp.linalg.norm(ref_f32), 1e-3)
    assert err_sem < 1.5e-1, err_sem

    # Also exercise the large-N K-tiled path (partial final chunk => in-kernel
    # masking + zero-padded w1) to verify the reduction grid end-to-end.
    out_tiled = jax.block_until_ready(
        discriminator_office(x, prep, k_tile=1792))
    err_tiled = jnp.linalg.norm(out_tiled - ref_bf16) / jnp.maximum(
        jnp.linalg.norm(ref_bf16), 1e-3)
    assert err_tiled < 2e-2, err_tiled

    print("KERNEL_OK")
</pallas_src>

<mosaic_0001>
module attributes {stable_mosaic.version = 11 : i64} {
  func.func @kernel(%arg0: i32, %arg1: memref<8x5184xf32, #tpu.memory_space<vmem>>, %arg2: memref<5184x128xbf16, #tpu.memory_space<vmem>>, %arg3: memref<1x128xf32, #tpu.memory_space<vmem>>, %arg4: memref<1x128xf32, #tpu.memory_space<vmem>>, %arg5: memref<128x64xbf16, #tpu.memory_space<vmem>>, %arg6: memref<1x64xf32, #tpu.memory_space<vmem>>, %arg7: memref<1x64xf32, #tpu.memory_space<vmem>>, %arg8: memref<64x32xbf16, #tpu.memory_space<vmem>>, %arg9: memref<1x32xf32, #tpu.memory_space<vmem>>, %arg10: memref<1x32xf32, #tpu.memory_space<vmem>>, %arg11: memref<32x1xbf16, #tpu.memory_space<vmem>>, %arg12: memref<1x1xf32, #tpu.memory_space<vmem>>, %arg13: memref<8x1xf32, #tpu.memory_space<vmem>>, %arg14: memref<8x128xf32, #tpu.memory_space<vmem>>) attributes {dimension_semantics = [#tpu.dimension_semantics<arbitrary>], iteration_bounds = array<i64: 1>, scalar_prefetch = 0 : i64, scratch_operands = 1 : i64, tpu.core_type = #tpu.core_type<tc>, window_params = [{transform_indices = @transform_0, window_bounds = array<i64: 8, 5184>}, {transform_indices = @transform_1, window_bounds = array<i64: 5184, 128>}, {pipeline_mode = #tpu.pipeline_mode<synchronous>, transform_indices = @transform_2, window_bounds = array<i64: 1, 128>}, {pipeline_mode = #tpu.pipeline_mode<synchronous>, transform_indices = @transform_3, window_bounds = array<i64: 1, 128>}, {pipeline_mode = #tpu.pipeline_mode<synchronous>, transform_indices = @transform_4, window_bounds = array<i64: 128, 64>}, {pipeline_mode = #tpu.pipeline_mode<synchronous>, transform_indices = @transform_5, window_bounds = array<i64: 1, 64>}, {pipeline_mode = #tpu.pipeline_mode<synchronous>, transform_indices = @transform_6, window_bounds = array<i64: 1, 64>}, {pipeline_mode = #tpu.pipeline_mode<synchronous>, transform_indices = @transform_7, window_bounds = array<i64: 64, 32>}, {pipeline_mode = #tpu.pipeline_mode<synchronous>, transform_indices = @transform_8, window_bounds = array<i64: 1, 32>}, {pipeline_mode = #tpu.pipeline_mode<synchronous>, transform_indices = @transform_9, window_bounds = array<i64: 1, 32>}, {pipeline_mode = #tpu.pipeline_mode<synchronous>, transform_indices = @transform_10, window_bounds = array<i64: 32, 1>}, {pipeline_mode = #tpu.pipeline_mode<synchronous>, transform_indices = @transform_11, window_bounds = array<i64: 1, 1>}, {pipeline_mode = #tpu.pipeline_mode<synchronous>, transform_indices = @transform_12, window_bounds = array<i64: 8, 1>}]} {
    %c0 = arith.constant 0 : index
    %c0_0 = arith.constant 0 : index
    %0 = vector.load %arg1[%c0, %c0_0] : memref<8x5184xf32, #tpu.memory_space<vmem>>, vector<8x5184xf32>
    %1 = arith.truncf %0 : vector<8x5184xf32> to vector<8x5184xbf16>
    %c0_1 = arith.constant 0 : index
    %c0_2 = arith.constant 0 : index
    %2 = vector.load %arg2[%c0_1, %c0_2] : memref<5184x128xbf16, #tpu.memory_space<vmem>>, vector<5184x128xbf16>
    %cst = arith.constant dense<0.000000e+00> : vector<8x128xf32>
    %3 = tpu.matmul %1, %2, %cst {dimension_numbers = #tpu.dot_dimension_numbers<[1], [0], [0], [1], [0, 0, 1, 1], [], []>} : vector<8x5184xbf16>, vector<5184x128xbf16>, vector<8x128xf32> -> vector<8x128xf32>
    %c0_i32 = arith.constant 0 : i32
    %4 = arith.cmpi eq, %arg0, %c0_i32 : i32
    %5 = arith.extui %4 : i1 to i32
    %c0_i32_3 = arith.constant 0 : i32
    %6 = arith.cmpi ne, %5, %c0_i32_3 : i32
    scf.if %6 {
      %c0_8 = arith.constant 0 : index
      %c0_9 = arith.constant 0 : index
      %13 = vector.load %arg14[%c0_8, %c0_9] : memref<8x128xf32, #tpu.memory_space<vmem>>, vector<8x128xf32>
      tpu.vector_store %arg14[%c0_8, %c0_9], %3 {strides = array<i32>} : memref<8x128xf32, #tpu.memory_space<vmem>>, vector<8x128xf32>,
    } else {
    }
    %c0_i32_4 = arith.constant 0 : i32
    %7 = arith.cmpi sgt, %arg0, %c0_i32_4 : i32
    %8 = arith.extui %7 : i1 to i32
    %c0_i32_5 = arith.constant 0 : i32
    %9 = arith.cmpi ne, %8, %c0_i32_5 : i32
    scf.if %9 {
      %c0_8 = arith.constant 0 : index
      %c0_9 = arith.constant 0 : index
      %13 = vector.load %arg14[%c0_8, %c0_9] : memref<8x128xf32, #tpu.memory_space<vmem>>, vector<8x128xf32>
      %14 = arith.addf %13, %3 : vector<8x128xf32>
      %c0_10 = arith.constant 0 : index
      %c0_11 = arith.constant 0 : index
      %15 = vector.load %arg14[%c0_10, %c0_11] : memref<8x128xf32, #tpu.memory_space<vmem>>, vector<8x128xf32>
      tpu.vector_store %arg14[%c0_10, %c0_11], %14 {strides = array<i32>} : memref<8x128xf32, #tpu.memory_space<vmem>>, vector<8x128xf32>,
    } else {
    }
    %c0_i32_6 = arith.constant 0 : i32
    %10 = arith.cmpi eq, %arg0, %c0_i32_6 : i32
    %11 = arith.extui %10 : i1 to i32
    %c0_i32_7 = arith.constant 0 : i32
    %12 = arith.cmpi ne, %11, %c0_i32_7 : i32
    scf.if %12 {
      %c0_8 = arith.constant 0 : index
      %c0_9 = arith.constant 0 : index
      %13 = vector.load %arg14[%c0_8, %c0_9] : memref<8x128xf32, #tpu.memory_space<vmem>>, vector<8x128xf32>
      %c0_10 = arith.constant 0 : index
      %c0_11 = arith.constant 0 : index
      %14 = vector.load %arg3[%c0_10, %c0_11] : memref<1x128xf32, #tpu.memory_space<vmem>>, vector<1x128xf32>
      %c0_12 = arith.constant 0 : index
      %c0_13 = arith.constant 0 : index
      %15 = vector.load %arg4[%c0_12, %c0_13] : memref<1x128xf32, #tpu.memory_space<vmem>>, vector<1x128xf32>
      %cst_14 = arith.constant dense<0.000000e+00> : vector<128xf32>
      %16 = vector.multi_reduction <add>, %13, %cst_14 [0] : vector<8x128xf32> to vector<128xf32>
      %17 = vector.shape_cast %16 : vector<128xf32> to vector<1x128xf32>
      %cst_15 = arith.constant 8.000000e+00 : f32
      %18 = vector.broadcast %cst_15 : f32 to vector<1x128xf32>
      %19 = arith.divf %17, %18 : vector<1x128xf32>
      %20 = vector.broadcast %19 : vector<1x128xf32> to vector<8x128xf32>
      %21 = arith.subf %13, %20 : vector<8x128xf32>
      %22 = vector.broadcast %19 : vector<1x128xf32> to vector<8x128xf32>
      %23 = arith.subf %13, %22 : vector<8x128xf32>
      %24 = arith.mulf %21, %23 : vector<8x128xf32>
      %cst_16 = arith.constant dense<0.000000e+00> : vector<128xf32>
      %25 = vector.multi_reduction <add>, %24, %cst_16 [0] : vector<8x128xf32> to vector<128xf32>
      %26 = vector.shape_cast %25 : vector<128xf32> to vector<1x128xf32>
      %cst_17 = arith.constant 8.000000e+00 : f32
      %27 = vector.broadcast %cst_17 : f32 to vector<1x128xf32>
      %28 = arith.divf %26, %27 : vector<1x128xf32>
      %29 = vector.broadcast %19 : vector<1x128xf32> to vector<8x128xf32>
      %30 = arith.subf %13, %29 : vector<8x128xf32>
      %cst_18 = arith.constant 9.99999974E-6 : f32
      %31 = vector.broadcast %cst_18 : f32 to vector<1x128xf32>
      %32 = arith.addf %28, %31 : vector<1x128xf32>
      %33 = math.rsqrt %32 : vector<1x128xf32>
      %34 = vector.broadcast %33 : vector<1x128xf32> to vector<8x128xf32>
      %35 = arith.mulf %30, %34 : vector<8x128xf32>
      %36 = vector.broadcast %14 : vector<1x128xf32> to vector<8x128xf32>
      %37 = arith.mulf %35, %36 : vector<8x128xf32>
      %38 = vector.broadcast %15 : vector<1x128xf32> to vector<8x128xf32>
      %39 = arith.addf %37, %38 : vector<8x128xf32>
      %cst_19 = arith.constant 0.000000e+00 : f32
      %40 = vector.broadcast %cst_19 : f32 to vector<8x128xf32>
      %41 = arith.maximumf %39, %40 : vector<8x128xf32>
      %42 = arith.truncf %41 : vector<8x128xf32> to vector<8x128xbf16>
      %c0_20 = arith.constant 0 : index
      %c0_21 = arith.constant 0 : index
      %43 = vector.load %arg5[%c0_20, %c0_21] : memref<128x64xbf16, #tpu.memory_space<vmem>>, vector<128x64xbf16>
      %cst_22 = arith.constant dense<0.000000e+00> : vector<8x64xf32>
      %44 = tpu.matmul %42, %43, %cst_22 {dimension_numbers = #tpu.dot_dimension_numbers<[1], [0], [0], [1], [0, 0, 1, 1], [], []>} : vector<8x128xbf16>, vector<128x64xbf16>, vector<8x64xf32> -> vector<8x64xf32>
      %c0_23 = arith.constant 0 : index
      %c0_24 = arith.constant 0 : index
      %45 = vector.load %arg6[%c0_23, %c0_24] : memref<1x64xf32, #tpu.memory_space<vmem>>, vector<1x64xf32>
      %c0_25 = arith.constant 0 : index
      %c0_26 = arith.constant 0 : index
      %46 = vector.load %arg7[%c0_25, %c0_26] : memref<1x64xf32, #tpu.memory_space<vmem>>, vector<1x64xf32>
      %cst_27 = arith.constant dense<0.000000e+00> : vector<64xf32>
      %47 = vector.multi_reduction <add>, %44, %cst_27 [0] : vector<8x64xf32> to vector<64xf32>
      %48 = vector.shape_cast %47 : vector<64xf32> to vector<1x64xf32>
      %cst_28 = arith.constant 8.000000e+00 : f32
      %49 = vector.broadcast %cst_28 : f32 to vector<1x64xf32>
      %50 = arith.divf %48, %49 : vector<1x64xf32>
      %51 = vector.broadcast %50 : vector<1x64xf32> to vector<8x64xf32>
      %52 = arith.subf %44, %51 : vector<8x64xf32>
      %53 = vector.broadcast %50 : vector<1x64xf32> to vector<8x64xf32>
      %54 = arith.subf %44, %53 : vector<8x64xf32>
      %55 = arith.mulf %52, %54 : vector<8x64xf32>
      %cst_29 = arith.constant dense<0.000000e+00> : vector<64xf32>
      %56 = vector.multi_reduction <add>, %55, %cst_29 [0] : vector<8x64xf32> to vector<64xf32>
      %57 = vector.shape_cast %56 : vector<64xf32> to vector<1x64xf32>
      %cst_30 = arith.constant 8.000000e+00 : f32
      %58 = vector.broadcast %cst_30 : f32 to vector<1x64xf32>
      %59 = arith.divf %57, %58 : vector<1x64xf32>
      %60 = vector.broadcast %50 : vector<1x64xf32> to vector<8x64xf32>
      %61 = arith.subf %44, %60 : vector<8x64xf32>
      %cst_31 = arith.constant 9.99999974E-6 : f32
      %62 = vector.broadcast %cst_31 : f32 to vector<1x64xf32>
      %63 = arith.addf %59, %62 : vector<1x64xf32>
      %64 = math.rsqrt %63 : vector<1x64xf32>
      %65 = vector.broadcast %64 : vector<1x64xf32> to vector<8x64xf32>
      %66 = arith.mulf %61, %65 : vector<8x64xf32>
      %67 = vector.broadcast %45 : vector<1x64xf32> to vector<8x64xf32>
      %68 = arith.mulf %66, %67 : vector<8x64xf32>
      %69 = vector.broadcast %46 : vector<1x64xf32> to vector<8x64xf32>
      %70 = arith.addf %68, %69 : vector<8x64xf32>
      %cst_32 = arith.constant 0.000000e+00 : f32
      %71 = vector.broadcast %cst_32 : f32 to vector<8x64xf32>
      %72 = arith.maximumf %70, %71 : vector<8x64xf32>
      %73 = arith.truncf %72 : vector<8x64xf32> to vector<8x64xbf16>
      %c0_33 = arith.constant 0 : index
      %c0_34 = arith.constant 0 : index
      %74 = vector.load %arg8[%c0_33, %c0_34] : memref<64x32xbf16, #tpu.memory_space<vmem>>, vector<64x32xbf16>
      %cst_35 = arith.constant dense<0.000000e+00> : vector<8x32xf32>
      %75 = tpu.matmul %73, %74, %cst_35 {dimension_numbers = #tpu.dot_dimension_numbers<[1], [0], [0], [1], [0, 0, 1, 1], [], []>} : vector<8x64xbf16>, vector<64x32xbf16>, vector<8x32xf32> -> vector<8x32xf32>
      %c0_36 = arith.constant 0 : index
      %c0_37 = arith.constant 0 : index
      %76 = vector.load %arg9[%c0_36, %c0_37] : memref<1x32xf32, #tpu.memory_space<vmem>>, vector<1x32xf32>
      %c0_38 = arith.constant 0 : index
      %c0_39 = arith.constant 0 : index
      %77 = vector.load %arg10[%c0_38, %c0_39] : memref<1x32xf32, #tpu.memory_space<vmem>>, vector<1x32xf32>
      %cst_40 = arith.constant dense<0.000000e+00> : vector<32xf32>
      %78 = vector.multi_reduction <add>, %75, %cst_40 [0] : vector<8x32xf32> to vector<32xf32>
      %79 = vector.shape_cast %78 : vector<32xf32> to vector<1x32xf32>
      %cst_41 = arith.constant 8.000000e+00 : f32
      %80 = vector.broadcast %cst_41 : f32 to vector<1x32xf32>
      %81 = arith.divf %79, %80 : vector<1x32xf32>
      %82 = vector.broadcast %81 : vector<1x32xf32> to vector<8x32xf32>
      %83 = arith.subf %75, %82 : vector<8x32xf32>
      %84 = vector.broadcast %81 : vector<1x32xf32> to vector<8x32xf32>
      %85 = arith.subf %75, %84 : vector<8x32xf32>
      %86 = arith.mulf %83, %85 : vector<8x32xf32>
      %cst_42 = arith.constant dense<0.000000e+00> : vector<32xf32>
      %87 = vector.multi_reduction <add>, %86, %cst_42 [0] : vector<8x32xf32> to vector<32xf32>
      %88 = vector.shape_cast %87 : vector<32xf32> to vector<1x32xf32>
      %cst_43 = arith.constant 8.000000e+00 : f32
      %89 = vector.broadcast %cst_43 : f32 to vector<1x32xf32>
      %90 = arith.divf %88, %89 : vector<1x32xf32>
      %91 = vector.broadcast %81 : vector<1x32xf32> to vector<8x32xf32>
      %92 = arith.subf %75, %91 : vector<8x32xf32>
      %cst_44 = arith.constant 9.99999974E-6 : f32
      %93 = vector.broadcast %cst_44 : f32 to vector<1x32xf32>
      %94 = arith.addf %90, %93 : vector<1x32xf32>
      %95 = math.rsqrt %94 : vector<1x32xf32>
      %96 = vector.broadcast %95 : vector<1x32xf32> to vector<8x32xf32>
      %97 = arith.mulf %92, %96 : vector<8x32xf32>
      %98 = vector.broadcast %76 : vector<1x32xf32> to vector<8x32xf32>
      %99 = arith.mulf %97, %98 : vector<8x32xf32>
      %100 = vector.broadcast %77 : vector<1x32xf32> to vector<8x32xf32>
      %101 = arith.addf %99, %100 : vector<8x32xf32>
      %cst_45 = arith.constant 0.000000e+00 : f32
      %102 = vector.broadcast %cst_45 : f32 to vector<8x32xf32>
      %103 = arith.maximumf %101, %102 : vector<8x32xf32>
      %104 = arith.truncf %103 : vector<8x32xf32> to vector<8x32xbf16>
      %c0_46 = arith.constant 0 : index
      %c0_47 = arith.constant 0 : index
      %105 = vector.load %arg11[%c0_46, %c0_47] : memref<32x1xbf16, #tpu.memory_space<vmem>>, vector<32x1xbf16>
      %cst_48 = arith.constant dense<0.000000e+00> : vector<8x1xf32>
      %106 = tpu.matmul %104, %105, %cst_48 {dimension_numbers = #tpu.dot_dimension_numbers<[1], [0], [0], [1], [0, 0, 1, 1], [], []>} : vector<8x32xbf16>, vector<32x1xbf16>, vector<8x1xf32> -> vector<8x1xf32>
      %c0_49 = arith.constant 0 : index
      %c0_50 = arith.constant 0 : index
      %107 = vector.load %arg12[%c0_49, %c0_50] : memref<1x1xf32, #tpu.memory_space<vmem>>, vector<1x1xf32>
      %108 = vector.broadcast %107 : vector<1x1xf32> to vector<8x1xf32>
      %109 = arith.addf %106, %108 : vector<8x1xf32>
      %c0_51 = arith.constant 0 : index
      %c0_52 = arith.constant 0 : index
      %110 = vector.load %arg13[%c0_51, %c0_52] : memref<8x1xf32, #tpu.memory_space<vmem>>, vector<8x1xf32>
      tpu.vector_store %arg13[%c0_51, %c0_52], %109 {strides = array<i32>} : memref<8x1xf32, #tpu.memory_space<vmem>>, vector<8x1xf32>,
    } else {
    }
    return
  }
  func.func @transform_0(%arg0: i32) -> (i32, i32) {
    %c0_i32 = arith.constant 0 : i32
    %c0_i32_0 = arith.constant 0 : i32
    return %c0_i32, %arg0 : i32, i32
  }
  func.func @transform_1(%arg0: i32) -> (i32, i32) {
    %c0_i32 = arith.constant 0 : i32
    %c0_i32_0 = arith.constant 0 : i32
    return %arg0, %c0_i32 : i32, i32
  }
  func.func @transform_2(%arg0: i32) -> (i32, i32) {
    %c0_i32 = arith.constant 0 : i32
    %c0_i32_0 = arith.constant 0 : i32
    %c0_i32_1 = arith.constant 0 : i32
    return %c0_i32, %c0_i32_0 : i32, i32
  }
  func.func @transform_3(%arg0: i32) -> (i32, i32) {
    %c0_i32 = arith.constant 0 : i32
    %c0_i32_0 = arith.constant 0 : i32
    %c0_i32_1 = arith.constant 0 : i32
    return %c0_i32, %c0_i32_0 : i32, i32
  }
  func.func @transform_4(%arg0: i32) -> (i32, i32) {
    %c0_i32 = arith.constant 0 : i32
    %c0_i32_0 = arith.constant 0 : i32
    %c0_i32_1 = arith.constant 0 : i32
    return %c0_i32, %c0_i32_0 : i32, i32
  }
  func.func @transform_5(%arg0: i32) -> (i32, i32) {
    %c0_i32 = arith.constant 0 : i32
    %c0_i32_0 = arith.constant 0 : i32
    %c0_i32_1 = arith.constant 0 : i32
    return %c0_i32, %c0_i32_0 : i32, i32
  }
  func.func @transform_6(%arg0: i32) -> (i32, i32) {
    %c0_i32 = arith.constant 0 : i32
    %c0_i32_0 = arith.constant 0 : i32
    %c0_i32_1 = arith.constant 0 : i32
    return %c0_i32, %c0_i32_0 : i32, i32
  }
  func.func @transform_7(%arg0: i32) -> (i32, i32) {
    %c0_i32 = arith.constant 0 : i32
    %c0_i32_0 = arith.constant 0 : i32
    %c0_i32_1 = arith.constant 0 : i32
    return %c0_i32, %c0_i32_0 : i32, i32
  }
  func.func @transform_8(%arg0: i32) -> (i32, i32) {
    %c0_i32 = arith.constant 0 : i32
    %c0_i32_0 = arith.constant 0 : i32
    %c0_i32_1 = arith.constant 0 : i32
    return %c0_i32, %c0_i32_0 : i32, i32
  }
  func.func @transform_9(%arg0: i32) -> (i32, i32) {
    %c0_i32 = arith.constant 0 : i32
    %c0_i32_0 = arith.constant 0 : i32
    %c0_i32_1 = arith.constant 0 : i32
    return %c0_i32, %c0_i32_0 : i32, i32
  }
  func.func @transform_10(%arg0: i32) -> (i32, i32) {
    %c0_i32 = arith.constant 0 : i32
    %c0_i32_0 = arith.constant 0 : i32
    %c0_i32_1 = arith.constant 0 : i32
    return %c0_i32, %c0_i32_0 : i32, i32
  }
  func.func @transform_11(%arg0: i32) -> (i32, i32) {
    %c0_i32 = arith.constant 0 : i32
    %c0_i32_0 = arith.constant 0 : i32
    %c0_i32_1 = arith.constant 0 : i32
    return %c0_i32, %c0_i32_0 : i32, i32
  }
  func.func @transform_12(%arg0: i32) -> (i32, i32) {
    %c0_i32 = arith.constant 0 : i32
    %c0_i32_0 = arith.constant 0 : i32
    %c0_i32_1 = arith.constant 0 : i32
    return %c0_i32, %c0_i32_0 : i32, i32
  }
}

</mosaic_0001>

<bundles_post_ra>
// kernel: tpu_custom_call.1
= control target key start
LH: loop header
LB: loop body
LE: loop exit
PB: predicated region body
PF: predicated region fallthrough
CT: control target
= control target key end

     0   :  { %s5776_s0 = inlined_call_operand.hbm [shape: f32[8,5184], index: 0, kind: input, shape index: {}]   ;;  %s5777_s1 = inlined_call_operand.hbm [shape: bf16[5184,128], index: 1, kind: input, shape index: {}]   ;;  %s5778_s2 = inlined_call_operand.hbm [shape: f32[1,128], index: 2, kind: input, shape index: {}]   ;;  %s5779_s3 = inlined_call_operand.hbm [shape: f32[1,128], index: 3, kind: input, shape index: {}]   ;;  %s5780_s4 = inlined_call_operand.vmem [shape: bf16[128,64], index: 4, kind: input, shape index: {}]   ;;  %s5781_s5 = inlined_call_operand.hbm [shape: f32[1,64], index: 5, kind: input, shape index: {}]   ;;  %s5782_s6 = inlined_call_operand.hbm [shape: f32[1,64], index: 6, kind: input, shape index: {}]   ;;  %s5783_s7 = inlined_call_operand.vmem [shape: bf16[64,32], index: 7, kind: input, shape index: {}]   ;;  %s5784_s8 = inlined_call_operand.hbm [shape: f32[1,32], index: 8, kind: input, shape index: {}]   ;;  %s5785_s9 = inlined_call_operand.hbm [shape: f32[1,32], index: 9, kind: input, shape index: {}]   ;;  %s5786_s10 = inlined_call_operand.vmem [shape: bf16[32,1], index: 10, kind: input, shape index: {}]   ;;  %s5787_s11 = inlined_call_operand.<no memory space> [shape: f32[1,1], index: 11, kind: input, shape index: {}]   ;;  %s5788_s12 = inlined_call_operand.vmem [shape: f32[8,1], index: 12, kind: output, shape index: {}]  }
   0x1   :  { %v17_v0 = vstv %s5787_s11 }
   0x2   :  { %18 = vst [vmem:[#allocation3] sm:$0x1] %v17_v0 }
   0x3   :  { %19 = vsyncpa [#allocation5], 0 }
   0x4   :  { %20 = vsyncpa [#allocation7], 0 }
   0x5   :  { %21 = vsyncpa [#allocation10], 0 }
   0x6   :  { %22 = vsyncpa [#allocation13], 0  ;;  %s39_s25 = sshll.u32 %s5777_s1, 4  ;;  %s40_s25 = int_to_ptr.hbm [resolvable:$true] %s39_s25 }
   0x7   :  { %23 = vsyncpa [#allocation16], 0  ;;  %s5607_s26 = smov [#allocation6]   ;;  %s64_s30 = sshll.u32 %s5779_s3, 4  ;;  %s65_s30 = int_to_ptr.hbm [resolvable:$true] %s64_s30 }
   0x8   :  { %s41_s27 = sshll.u32 %s5607_s26, 4  ;;  %s5608_s13 = smov 64   ;;  %s42_s27 = int_to_ptr.vmem [resolvable:$true] %s41_s27 }
   0x9   :  { %s5609_s11 = smov 4   ;;  %s5610_s14 = smov [#allocation9]  }
   0xa   :  { %47 = dma.hbm_to_vmem [thread:$0]  %s40_s25, 41472, %s42_s27, [#allocation7], %s5608_s13, %s5608_s13, %s5609_s11  }
   0xb   :  { %s66_s15 = sshll.u32 %s5610_s14, 4  ;;  %s88_s18 = sshll.u32 %s5782_s6, 4  ;;  %s67_s15 = int_to_ptr.vmem [resolvable:$true] %s66_s15  ;;  %s89_s18 = int_to_ptr.hbm [resolvable:$true] %s88_s18 }
   0xc   :  { %69 = dma.hbm_to_vmem [thread:$0]  %s65_s30, 16, %s67_s15, [#allocation10]  }
   0xd   :  { %s29_s20 = sshll.u32 %s5776_s0, 4  ;;  %s5611_s21 = smov [#allocation12]   ;;  %s30_s20 = int_to_ptr.hbm [resolvable:$true] %s29_s20 }
   0xe   :  { %s90_s22 = sshll.u32 %s5611_s21, 4  ;;  %s5612_s3 = smov [#allocation4]   ;;  %s91_s22 = int_to_ptr.vmem [resolvable:$true] %s90_s22 }
   0xf   :  { %93 = dma.hbm_to_vmem [thread:$0]  %s89_s18, 16, %s91_s22, [#allocation13]  }
  0x10   :  { %s31_s23 = sshll.u32 %s5612_s3, 4  ;;  %s53_s26 = sshll.u32 %s5778_s2, 4  ;;  %s32_s23 = int_to_ptr.vmem [resolvable:$true] %s31_s23  ;;  %s54_s26 = int_to_ptr.hbm [resolvable:$true] %s53_s26 }
  0x11   :  { %34 = dma.hbm_to_vmem [thread:$0]  %s30_s20, 5248, %s32_s23, [#allocation5]  }
  0x12   :  { %s77_s28 = sshll.u32 %s5781_s5, 4  ;;  %s5613_s29 = smov [#allocation8]   ;;  %s78_s28 = int_to_ptr.hbm [resolvable:$true] %s77_s28 }
  0x13   :  { %s55_s0 = sshll.u32 %s5613_s29, 4  ;;  %s5614_s30 = smov [#allocation11]   ;;  %s56_s0 = int_to_ptr.vmem [resolvable:$true] %s55_s0 }
  0x14   :  { %58 = dma.hbm_to_vmem [thread:$0]  %s54_s26, 16, %s56_s0, [#allocation7]  }
  0x15   :  { %s79_s13 = sshll.u32 %s5614_s30, 4  ;;  %s101_s15 = sshll.u32 %s5784_s8, 4  ;;  %s80_s13 = int_to_ptr.vmem [resolvable:$true] %s79_s13  ;;  %s102_s15 = int_to_ptr.hbm [resolvable:$true] %s101_s15 }
  0x16   :  { %82 = dma.hbm_to_vmem [thread:$0]  %s78_s28, 16, %s80_s13, [#allocation10]  }
  0x17   :  { %s112_s17 = sshll.u32 %s5785_s9, 4  ;;  %s5615_s18 = smov [#allocation14]   ;;  %s113_s17 = int_to_ptr.hbm [resolvable:$true] %s112_s17 }
  0x18   :  { %s103_s5 = sshll.u32 %s5615_s18, 4  ;;  %s5616_s1 = smov [#allocation15]   ;;  %s104_s5 = int_to_ptr.vmem [resolvable:$true] %s103_s5 }
  0x19   :  { %106 = dma.hbm_to_vmem [thread:$0]  %s102_s15, 16, %s104_s5, [#allocation13]  }
  0x1a   :  { %s114_s19 = sshll.u32 %s5616_s1, 4  ;;  %s115_s19 = int_to_ptr.vmem [resolvable:$true] %s114_s19 }
  0x1b   :  { %117 = dma.hbm_to_vmem [thread:$0]  %s113_s17, 16, %s115_s19, [#allocation16]  }
  0x1c   :  { %5597 = dma.done.wait [#allocation5], 5248  }
  0x1d   :  { %5598 = vsyncadd [#allocation5], 4294962048 }
  0x1e   :  { %5599 = dma.done.wait [#allocation7], 41488  }
  0x1f   :  { %5600 = vsyncadd [#allocation7], 4294925808 }
  0x20   :  { %5601 = dma.done.wait [#allocation10], 32  }
  0x21   :  { %5602 = vsyncadd [#allocation10], 4294967264 }
  0x22   :  { %5603 = dma.done.wait [#allocation13], 32  }
  0x23   :  { %5604 = vsyncadd [#allocation13], 4294967264 }
  0x24   :  { %5605 = dma.done.wait [#allocation16], 16  }
  0x25   :  { %5606 = vsyncadd [#allocation16], 4294967280  ;;  %v5048_v1 = vld [vmem:[#allocation6 + $0x38] sm:$0xff]  ;;  %v5047_v5 = vld [vmem:[#allocation6 + $0x30] sm:$0xff]  ;;  %vm2829_vm0 = vcmask 523264   ;;  %vm3598_vm8 = vcmask 261120  }
  0x26   :  { %v5064_v2 = vld [vmem:[#allocation6 + $0xb8] sm:$0xff]  ;;  %2833 = vmatpush.bf16.msra.mxu0 %v5048_v1  ;;  %v5063_v6 = vld [vmem:[#allocation6 + $0xb0] sm:$0xff]  ;;  %v5046_v9 = vld [vmem:[#allocation6 + $0x28] sm:$0xff]  ;;  %vm3675_vm12 = vcmask 7168  }
  0x27   :  { %v5072_v3 = vld [vmem:[#allocation6 + $0xf8] sm:$0xff]  ;;  %2859 = vmatpush.bf16.msra.mxu2 %v5064_v2  ;;  %v5071_v7 = vld [vmem:[#allocation6 + $0xf0] sm:$0xff]  ;;  %v5062_v10 = vld [vmem:[#allocation6 + $0xa8] sm:$0xff] }
  0x28   :  { %v5056_v4 = vld [vmem:[#allocation6 + $0x78] sm:$0xff]  ;;  %2872 = vmatpush.bf16.msra.mxu3 %v5072_v3  ;;  %v5055_v8 = vld [vmem:[#allocation6 + $0x70] sm:$0xff]  ;;  %v5070_v11 = vld [vmem:[#allocation6 + $0xe8] sm:$0xff] }
  0x29   :  { %2846 = vmatpush.bf16.msra.mxu1 %v5056_v4  ;;  %v5054_v12 = vld [vmem:[#allocation6 + $0x68] sm:$0xff]  ;;  %v5045_v13 = vld [vmem:[#allocation6 + $0x20] sm:$0xff]  ;;  %v5044_v17 = vld [vmem:[#allocation6 + $0x18] sm:$0xff] }
  0x2a   :  { %2834 = vmatpush.bf16.msra.mxu0 %v5047_v5  ;;  %v5061_v14 = vld [vmem:[#allocation6 + $0xa0] sm:$0xff]  ;;  %v5060_v18 = vld [vmem:[#allocation6 + $0x98] sm:$0xff]  ;;  %v5043_v21 = vld [vmem:[#allocation6 + $0x10] sm:$0xff] }
  0x2b   :  { %2860 = vmatpush.bf16.msra.mxu2 %v5063_v6  ;;  %v5069_v15 = vld [vmem:[#allocation6 + $0xe0] sm:$0xff]  ;;  %v5068_v19 = vld [vmem:[#allocation6 + $0xd8] sm:$0xff]  ;;  %v5059_v22 = vld [vmem:[#allocation6 + $0x90] sm:$0xff] }
  0x2c   :  { %2873 = vmatpush.bf16.msra.mxu3 %v5071_v7  ;;  %v5053_v16 = vld [vmem:[#allocation6 + $0x60] sm:$0xff]  ;;  %v5052_v20 = vld [vmem:[#allocation6 + $0x58] sm:$0xff]  ;;  %v5067_v23 = vld [vmem:[#allocation6 + $0xd0] sm:$0xff] }
  0x2d   :  { %2847 = vmatpush.bf16.msra.mxu1 %v5055_v8  ;;  %v5051_v24 = vld [vmem:[#allocation6 + $0x50] sm:$0xff]  ;;  %v5042_v25 = vld [vmem:[#allocation6 + $0x8] sm:$0xff]  ;;  %v5041_v29 = vld [vmem:[#allocation6] sm:$0xff] }
  0x2e   :  { %2835 = vmatpush.bf16.msra.mxu0 %v5046_v9  ;;  %v5058_v26 = vld [vmem:[#allocation6 + $0x88] sm:$0xff]  ;;  %v5057_v30 = vld [vmem:[#allocation6 + $0x80] sm:$0xff]  ;;  %v5080_v33 = vld [vmem:[#allocation6 + $0x138] sm:$0xff] }
  0x2f   :  { %2861 = vmatpush.bf16.msra.mxu2 %v5062_v10  ;;  %v5066_v27 = vld [vmem:[#allocation6 + $0xc8] sm:$0xff]  ;;  %v5065_v32 = vld [vmem:[#allocation6 + $0xc0] sm:$0xff]  ;;  %v155_v34 = vld [vmem:[#allocation4] sm:$0xff] }
  0x30   :  { %2874 = vmatpush.bf16.msra.mxu3 %v5070_v11  ;;  %v5050_v28 = vld [vmem:[#allocation6 + $0x48] sm:$0xff]  ;;  %v5096_v35 = vld [vmem:[#allocation6 + $0x1b8] sm:$0xff]  ;;  %v158_v37 = vld [vmem:[#allocation4 + $0x18] sm:$0xff]  ;;  %v196_v41 = vpack.c.bf16 %v155_v34, %v155_v34 }
  0x31   :  { %2848 = vmatpush.bf16.msra.mxu1 %v5054_v12  ;;  %v157_v31 = vld [vmem:[#allocation4 + $0x10] sm:$0xff]  ;;  %v5104_v36 = vld [vmem:[#allocation6 + $0x1f8] sm:$0xff]  ;;  %v5049_v38 = vld [vmem:[#allocation6 + $0x40] sm:$0xff]  ;;  %v199_v44 = vpack.c.bf16 %v158_v37, %v158_v37 }
  0x32   :  { %2836 = vmatpush.bf16.msra.mxu0 %v5045_v13  ;;  %v198_v39 = vpack.c.bf16 %v157_v31, %v157_v31  ;;  %v5088_v40 = vld [vmem:[#allocation6 + $0x178] sm:$0xff]  ;;  %v156_v42 = vld [vmem:[#allocation4 + $0x8] sm:$0xff]  ;;  %v5079_v43 = vld [vmem:[#allocation6 + $0x130] sm:$0xff] }
  0x33   :  { %2862 = vmatpush.bf16.msra.mxu2 %v5061_v14  ;;  %v5095_v45 = vld [vmem:[#allocation6 + $0x1b0] sm:$0xff]  ;;  %v197_v47 = vpack.c.bf16 %v156_v42, %v156_v42  ;;  %v5078_v49 = vld [vmem:[#allocation6 + $0x128] sm:$0xff]  ;;  %v5077_v53 = vld [vmem:[#allocation6 + $0x120] sm:$0xff] }
  0x34   :  { %2875 = vmatpush.bf16.msra.mxu3 %v5069_v15  ;;  %v5103_v46 = vld [vmem:[#allocation6 + $0x1f0] sm:$0xff]  ;;  %v5094_v50 = vld [vmem:[#allocation6 + $0x1a8] sm:$0xff]  ;;  %v5093_v54 = vld [vmem:[#allocation6 + $0x1a0] sm:$0xff] }
  0x35   :  { %2849 = vmatpush.bf16.msra.mxu1 %v5053_v16  ;;  %v5087_v48 = vld [vmem:[#allocation6 + $0x170] sm:$0xff]  ;;  %v5102_v51 = vld [vmem:[#allocation6 + $0x1e8] sm:$0xff]  ;;  %v5101_v55 = vld [vmem:[#allocation6 + $0x1e0] sm:$0xff] }
  0x36   :  { %2837 = vmatpush.bf16.msra.mxu0 %v5044_v17  ;;  %v5086_v52 = vld [vmem:[#allocation6 + $0x168] sm:$0xff]  ;;  %v5085_v56 = vld [vmem:[#allocation6 + $0x160] sm:$0xff]  ;;  %v5076_v57 = vld [vmem:[#allocation6 + $0x118] sm:$0xff] }
  0x37   :  { %2863 = vmatpush.bf16.msra.mxu2 %v5060_v18  ;;  %v5092_v58 = vld [vmem:[#allocation6 + $0x198] sm:$0xff]  ;;  %v5075_v61 = vld [vmem:[#allocation6 + $0x110] sm:$0xff]  ;;  %v5074_v1 = vld [vmem:[#allocation6 + $0x108] sm:$0xff] }
  0x38   :  { %2876 = vmatpush.bf16.msra.mxu3 %v5068_v19  ;;  %v5100_v59 = vld [vmem:[#allocation6 + $0x1d8] sm:$0xff]  ;;  %v5091_v62 = vld [vmem:[#allocation6 + $0x190] sm:$0xff]  ;;  %v5090_v2 = vld [vmem:[#allocation6 + $0x188] sm:$0xff] }
  0x39   :  { %2850 = vmatpush.bf16.msra.mxu1 %v5052_v20  ;;  %v5084_v60 = vld [vmem:[#allocation6 + $0x158] sm:$0xff]  ;;  %v5099_v63 = vld [vmem:[#allocation6 + $0x1d0] sm:$0xff]  ;;  %v5098_v3 = vld [vmem:[#allocation6 + $0x1c8] sm:$0xff] }
  0x3a   :  { %2838 = vmatpush.bf16.msra.mxu0 %v5043_v21  ;;  %v5083_v0 = vld [vmem:[#allocation6 + $0x150] sm:$0xff]  ;;  %v5082_v4 = vld [vmem:[#allocation6 + $0x148] sm:$0xff]  ;;  %v5073_v5 = vld [vmem:[#allocation6 + $0x100] sm:$0xff] }
  0x3b   :  { %2864 = vmatpush.bf16.msra.mxu2 %v5059_v22  ;;  %v5089_v6 = vld [vmem:[#allocation6 + $0x180] sm:$0xff]  ;;  %v5112_v8 = vld [vmem:[#allocation6 + $0x238] sm:$0xff]  ;;  %v161_v9 = vld [vmem:[#allocation4 + $0x30] sm:$0xff] }
  0x3c   :  { %2877 = vmatpush.bf16.msra.mxu3 %v5067_v23  ;;  %v5097_v7 = vld [vmem:[#allocation6 + $0x1c0] sm:$0xff]  ;;  %v5128_v10 = vld [vmem:[#allocation6 + $0x2b8] sm:$0xff]  ;;  %v162_v12 = vld [vmem:[#allocation4 + $0x38] sm:$0xff]  ;;  %v202_v16 = vpack.c.bf16 %v161_v9, %v161_v9 }
  0x3d   :  { %2851 = vmatpush.bf16.msra.mxu1 %v5051_v24  ;;  %v159_v11 = vld [vmem:[#allocation4 + $0x20] sm:$0xff]  ;;  %v5081_v14 = vld [vmem:[#allocation6 + $0x140] sm:$0xff]  ;;  %v203_v19 = vpack.c.bf16 %v162_v12, %v162_v12  ;;  %v5111_v20 = vld [vmem:[#allocation6 + $0x230] sm:$0xff] }
  0x3e   :  { %2839 = vmatpush.bf16.msra.mxu0 %v5042_v25  ;;  %v5136_v13 = vld [vmem:[#allocation6 + $0x2f8] sm:$0xff]  ;;  %v160_v17 = vld [vmem:[#allocation4 + $0x28] sm:$0xff]  ;;  %v200_v18 = vpack.c.bf16 %v159_v11, %v159_v11  ;;  %v5127_v21 = vld [vmem:[#allocation6 + $0x2b0] sm:$0xff] }
  0x3f   :  { %2865 = vmatpush.bf16.msra.mxu2 %v5058_v26  ;;  %v5120_v15 = vld [vmem:[#allocation6 + $0x278] sm:$0xff]  ;;  %v5135_v22 = vld [vmem:[#allocation6 + $0x2f0] sm:$0xff]  ;;  %v201_v23 = vpack.c.bf16 %v160_v17, %v160_v17  ;;  %v5110_v25 = vld [vmem:[#allocation6 + $0x228] sm:$0xff] }
  0x40   :  { %2878 = vmatpush.bf16.msra.mxu3 %v5066_v27  ;;  %v5119_v24 = vld [vmem:[#allocation6 + $0x270] sm:$0xff]  ;;  %v5126_v26 = vld [vmem:[#allocation6 + $0x2a8] sm:$0xff]  ;;  %v5133_v31 = vld [vmem:[#allocation6 + $0x2e0] sm:$0xff] }
  0x41   :  { %2852 = vmatpush.bf16.msra.mxu1 %v5050_v28  ;;  %v5134_v27 = vld [vmem:[#allocation6 + $0x2e8] sm:$0xff]  ;;  %v5124_v34 = vld [vmem:[#allocation6 + $0x298] sm:$0xff]  ;;  %v5107_v37 = vld [vmem:[#allocation6 + $0x210] sm:$0xff] }
  0x42   :  { %2840 = vmatpush.bf16.msra.mxu0 %v5041_v29  ;;  %v5118_v28 = vld [vmem:[#allocation6 + $0x268] sm:$0xff]  ;;  %v5109_v29 = vld [vmem:[#allocation6 + $0x220] sm:$0xff]  ;;  %v5140_v9 = vld [vmem:[#allocation6 + $0x318] sm:$0xff] }
  0x43   :  { %2866 = vmatpush.bf16.msra.mxu2 %v5057_v30  ;;  %v5125_v30 = vld [vmem:[#allocation6 + $0x2a0] sm:$0xff]  ;;  %v5122_v42 = vld [vmem:[#allocation6 + $0x288] sm:$0xff]  ;;  %v5164_v11 = vld [vmem:[#allocation6 + $0x3d8] sm:$0xff] }
  0x44   :  { %2879 = vmatpush.bf16.msra.mxu3 %v5065_v32  ;;  %v5117_v32 = vld [vmem:[#allocation6 + $0x260] sm:$0xff]  ;;  %v5148_v12 = vld [vmem:[#allocation6 + $0x358] sm:$0xff]  ;;  %v5138_v17 = vld [vmem:[#allocation6 + $0x308] sm:$0xff] }
  0x45   :  { %2853 = vmatpush.bf16.msra.mxu1 %v5049_v38  ;;  %2841 = vmatmul.bf16.vlgmr.msra.gmra.mxu0 %v196_v41  ;;  %v5123_v38 = vld [vmem:[#allocation6 + $0x290] sm:$0xff]  ;;  %v5106_v41 = vld [vmem:[#allocation6 + $0x208] sm:$0xff] }
  0x46   :  { %2885 = vmatpush.bf16.msrb.mxu0 %v5080_v33  ;;  %2867 = vmatmul.bf16.vlgmr.msra.gmra.mxu2 %v198_v39  ;;  %v5108_v33 = vld [vmem:[#allocation6 + $0x218] sm:$0xff]  ;;  %v5131_v39 = vld [vmem:[#allocation6 + $0x2d0] sm:$0xff] }
  0x47   :  { %2911 = vmatpush.bf16.msrb.mxu2 %v5096_v35  ;;  %2880 = vmatmul.bf16.vlgmr.msra.gmra.mxu3 %v199_v44  ;;  %v5132_v35 = vld [vmem:[#allocation6 + $0x2d8] sm:$0xff]  ;;  %v5114_v44 = vld [vmem:[#allocation6 + $0x248] sm:$0xff] }
  0x48   :  { %2924 = vmatpush.bf16.msrb.mxu3 %v5104_v36  ;;  %2854 = vmatmul.bf16.vlgmr.msra.gmra.mxu1 %v197_v47  ;;  %v5116_v36 = vld [vmem:[#allocation6 + $0x258] sm:$0xff] }
  0x49   :  { %2898 = vmatpush.bf16.msrb.mxu1 %v5088_v40  ;;  %v5115_v40 = vld [vmem:[#allocation6 + $0x250] sm:$0xff]  ;;  %v163_v47 = vld [vmem:[#allocation4 + $0x40] sm:$0xff] }
  0x4a   :  { %2886 = vmatpush.bf16.msrb.mxu0 %v5079_v43  ;;  %v5130_v43 = vld [vmem:[#allocation6 + $0x2c8] sm:$0xff] }
  0x4b   :  { %2912 = vmatpush.bf16.msrb.mxu2 %v5095_v45  ;;  %v5105_v45 = vld [vmem:[#allocation6 + $0x200] sm:$0xff] }
  0x4c   :  { %2925 = vmatpush.bf16.msrb.mxu3 %v5103_v46  ;;  %v5121_v46 = vld [vmem:[#allocation6 + $0x280] sm:$0xff] }
  0x4d   :  { %2899 = vmatpush.bf16.msrb.mxu1 %v5087_v48  ;;  %v5129_v48 = vld [vmem:[#allocation6 + $0x2c0] sm:$0xff] }
  0x4e   :  { %2887 = vmatpush.bf16.msrb.mxu0 %v5078_v49  ;;  %v5144_v49 = vld [vmem:[#allocation6 + $0x338] sm:$0xff] }
  0x4f   :  { %2913 = vmatpush.bf16.msrb.mxu2 %v5094_v50  ;;  %v165_v50 = vld [vmem:[#allocation4 + $0x50] sm:$0xff] }
  0x50   :  { %2926 = vmatpush.bf16.msrb.mxu3 %v5102_v51  ;;  %v5160_v51 = vld [vmem:[#allocation6 + $0x3b8] sm:$0xff] }
  0x51   :  { %2900 = vmatpush.bf16.msrb.mxu1 %v5086_v52  ;;  %v5168_v52 = vld [vmem:[#allocation6 + $0x3f8] sm:$0xff] }
  0x52   :  { %2888 = vmatpush.bf16.msrb.mxu0 %v5077_v53  ;;  %v166_v53 = vld [vmem:[#allocation4 + $0x58] sm:$0xff] }
  0x53   :  { %2914 = vmatpush.bf16.msrb.mxu2 %v5093_v54  ;;  %v5113_v54 = vld [vmem:[#allocation6 + $0x240] sm:$0xff] }
  0x54   :  { %2927 = vmatpush.bf16.msrb.mxu3 %v5101_v55  ;;  %v204_v55 = vpack.c.bf16 %v163_v47, %v163_v47  ;;  %v5197_v47 = vld [vmem:[#allocation6 + $0x4e0] sm:$0xff] }
  0x55   :  { %2901 = vmatpush.bf16.msrb.mxu1 %v5085_v56  ;;  %v164_v56 = vld [vmem:[#allocation4 + $0x48] sm:$0xff] }
  0x56   :  { %2889 = vmatpush.bf16.msrb.mxu0 %v5076_v57  ;;  %v206_v57 = vpack.c.bf16 %v165_v50, %v165_v50  ;;  %v5188_v50 = vld [vmem:[#allocation6 + $0x498] sm:$0xff] }
  0x57   :  { %2915 = vmatpush.bf16.msrb.mxu2 %v5092_v58  ;;  %v5152_v58 = vld [vmem:[#allocation6 + $0x378] sm:$0xff] }
  0x58   :  { %2928 = vmatpush.bf16.msrb.mxu3 %v5100_v59  ;;  %v207_v59 = vpack.c.bf16 %v166_v53, %v166_v53  ;;  %v5171_v53 = vld [vmem:[#allocation6 + $0x410] sm:$0xff] }
  0x59   :  { %2902 = vmatpush.bf16.msrb.mxu1 %v5084_v60  ;;  %v5143_v60 = vld [vmem:[#allocation6 + $0x330] sm:$0xff] }
  0x5a   :  { %2890 = vmatpush.bf16.msrb.mxu0 %v5075_v61  ;;  %v205_v61 = vpack.c.bf16 %v164_v56, %v164_v56  ;;  %v5179_v56 = vld [vmem:[#allocation6 + $0x450] sm:$0xff] }
  0x5b   :  { %2916 = vmatpush.bf16.msrb.mxu2 %v5091_v62  ;;  %v5159_v62 = vld [vmem:[#allocation6 + $0x3b0] sm:$0xff] }
  0x5c   :  { %2929 = vmatpush.bf16.msrb.mxu3 %v5099_v63  ;;  %v5167_v63 = vld [vmem:[#allocation6 + $0x3f0] sm:$0xff] }
  0x5d   :  { %2903 = vmatpush.bf16.msrb.mxu1 %v5083_v0  ;;  %v5151_v0 = vld [vmem:[#allocation6 + $0x370] sm:$0xff] }
  0x5e   :  { %2891 = vmatpush.bf16.msrb.mxu0 %v5074_v1  ;;  %v5142_v1 = vld [vmem:[#allocation6 + $0x328] sm:$0xff] }
  0x5f   :  { %2917 = vmatpush.bf16.msrb.mxu2 %v5090_v2  ;;  %v5158_v2 = vld [vmem:[#allocation6 + $0x3a8] sm:$0xff] }
  0x60   :  { %2930 = vmatpush.bf16.msrb.mxu3 %v5098_v3  ;;  %v5166_v3 = vld [vmem:[#allocation6 + $0x3e8] sm:$0xff] }
  0x61   :  { %2904 = vmatpush.bf16.msrb.mxu1 %v5082_v4  ;;  %v5150_v4 = vld [vmem:[#allocation6 + $0x368] sm:$0xff] }
  0x62   :  { %2892 = vmatpush.bf16.msrb.mxu0 %v5073_v5  ;;  %v5141_v5 = vld [vmem:[#allocation6 + $0x320] sm:$0xff] }
  0x63   :  { %2918 = vmatpush.bf16.msrb.mxu2 %v5089_v6  ;;  %v5157_v6 = vld [vmem:[#allocation6 + $0x3a0] sm:$0xff] }
  0x64   :  { %2931 = vmatpush.bf16.msrb.mxu3 %v5097_v7  ;;  %v5165_v7 = vld [vmem:[#allocation6 + $0x3e0] sm:$0xff] }
  0x65   :  { %2905 = vmatpush.bf16.msrb.mxu1 %v5081_v14  ;;  %2893 = vmatmul.bf16.vlgmr.msrb.gmra.mxu0 %v200_v18  ;;  %v5155_v14 = vld [vmem:[#allocation6 + $0x390] sm:$0xff]  ;;  %v5154_v18 = vld [vmem:[#allocation6 + $0x388] sm:$0xff] }
  0x66   :  { %2937 = vmatpush.bf16.msra.mxu0 %v5112_v8  ;;  %2919 = vmatmul.bf16.vlgmr.msrb.gmra.mxu2 %v202_v16  ;;  %v5149_v8 = vld [vmem:[#allocation6 + $0x360] sm:$0xff]  ;;  %v5147_v16 = vld [vmem:[#allocation6 + $0x350] sm:$0xff] }
  0x67   :  { %2963 = vmatpush.bf16.msra.mxu2 %v5128_v10  ;;  %2932 = vmatmul.bf16.vlgmr.msrb.gmra.mxu3 %v203_v19  ;;  %v5156_v10 = vld [vmem:[#allocation6 + $0x398] sm:$0xff]  ;;  %v5162_v19 = vld [vmem:[#allocation6 + $0x3c8] sm:$0xff] }
  0x68   :  { %2976 = vmatpush.bf16.msra.mxu3 %v5136_v13  ;;  %2906 = vmatmul.bf16.vlgmr.msrb.gmra.mxu1 %v201_v23  ;;  %v5139_v13 = vld [vmem:[#allocation6 + $0x310] sm:$0xff]  ;;  %v5176_v23 = vld [vmem:[#allocation6 + $0x438] sm:$0xff] }
  0x69   :  { %2950 = vmatpush.bf16.msra.mxu1 %v5120_v15  ;;  %v5163_v15 = vld [vmem:[#allocation6 + $0x3d0] sm:$0xff] }
  0x6a   :  { %2938 = vmatpush.bf16.msra.mxu0 %v5111_v20  ;;  %v5146_v20 = vld [vmem:[#allocation6 + $0x348] sm:$0xff] }
  0x6b   :  { %2964 = vmatpush.bf16.msra.mxu2 %v5127_v21  ;;  %v5137_v21 = vld [vmem:[#allocation6 + $0x300] sm:$0xff] }
  0x6c   :  { %2977 = vmatpush.bf16.msra.mxu3 %v5135_v22  ;;  %v5153_v22 = vld [vmem:[#allocation6 + $0x380] sm:$0xff] }
  0x6d   :  { %2951 = vmatpush.bf16.msra.mxu1 %v5119_v24  ;;  %v167_v24 = vld [vmem:[#allocation4 + $0x60] sm:$0xff] }
  0x6e   :  { %2939 = vmatpush.bf16.msra.mxu0 %v5110_v25  ;;  %v169_v25 = vld [vmem:[#allocation4 + $0x70] sm:$0xff] }
  0x6f   :  { %2965 = vmatpush.bf16.msra.mxu2 %v5126_v26  ;;  %v5161_v26 = vld [vmem:[#allocation6 + $0x3c0] sm:$0xff] }
  0x70   :  { %2978 = vmatpush.bf16.msra.mxu3 %v5134_v27  ;;  %v5192_v27 = vld [vmem:[#allocation6 + $0x4b8] sm:$0xff] }
  0x71   :  { %2952 = vmatpush.bf16.msra.mxu1 %v5118_v28  ;;  %v170_v28 = vld [vmem:[#allocation4 + $0x78] sm:$0xff] }
  0x72   :  { %2940 = vmatpush.bf16.msra.mxu0 %v5109_v29  ;;  %v5200_v29 = vld [vmem:[#allocation6 + $0x4f8] sm:$0xff] }
  0x73   :  { %2966 = vmatpush.bf16.msra.mxu2 %v5125_v30  ;;  %v5145_v30 = vld [vmem:[#allocation6 + $0x340] sm:$0xff] }
  0x74   :  { %2979 = vmatpush.bf16.msra.mxu3 %v5133_v31  ;;  %v168_v31 = vld [vmem:[#allocation4 + $0x68] sm:$0xff] }
  0x75   :  { %2953 = vmatpush.bf16.msra.mxu1 %v5117_v32  ;;  %v208_v32 = vpack.c.bf16 %v167_v24, %v167_v24 }
  0x76   :  { %2941 = vmatpush.bf16.msra.mxu0 %v5108_v33  ;;  %v210_v33 = vpack.c.bf16 %v169_v25, %v169_v25  ;;  %v5213_v25 = vld [vmem:[#allocation6 + $0x560] sm:$0xff] }
  0x77   :  { %2967 = vmatpush.bf16.msra.mxu2 %v5124_v34  ;;  %v5184_v34 = vld [vmem:[#allocation6 + $0x478] sm:$0xff] }
  0x78   :  { %2980 = vmatpush.bf16.msra.mxu3 %v5132_v35  ;;  %v211_v35 = vpack.c.bf16 %v170_v28, %v170_v28  ;;  %v5220_v28 = vld [vmem:[#allocation6 + $0x598] sm:$0xff] }
  0x79   :  { %2954 = vmatpush.bf16.msra.mxu1 %v5116_v36  ;;  %v209_v36 = vpack.c.bf16 %v168_v31, %v168_v31 }
  0x7a   :  { %2942 = vmatpush.bf16.msra.mxu0 %v5107_v37  ;;  %v5175_v37 = vld [vmem:[#allocation6 + $0x430] sm:$0xff] }
  0x7b   :  { %2968 = vmatpush.bf16.msra.mxu2 %v5123_v38  ;;  %v5191_v38 = vld [vmem:[#allocation6 + $0x4b0] sm:$0xff] }
  0x7c   :  { %2981 = vmatpush.bf16.msra.mxu3 %v5131_v39  ;;  %v5199_v39 = vld [vmem:[#allocation6 + $0x4f0] sm:$0xff] }
  0x7d   :  { %2955 = vmatpush.bf16.msra.mxu1 %v5115_v40  ;;  %v5183_v40 = vld [vmem:[#allocation6 + $0x470] sm:$0xff] }
  0x7e   :  { %2943 = vmatpush.bf16.msra.mxu0 %v5106_v41  ;;  %v5174_v41 = vld [vmem:[#allocation6 + $0x428] sm:$0xff] }
  0x7f   :  { %2969 = vmatpush.bf16.msra.mxu2 %v5122_v42  ;;  %v5190_v42 = vld [vmem:[#allocation6 + $0x4a8] sm:$0xff] }
  0x80   :  { %2982 = vmatpush.bf16.msra.mxu3 %v5130_v43  ;;  %v5198_v43 = vld [vmem:[#allocation6 + $0x4e8] sm:$0xff] }
  0x81   :  { %2956 = vmatpush.bf16.msra.mxu1 %v5114_v44  ;;  %v5182_v44 = vld [vmem:[#allocation6 + $0x468] sm:$0xff] }
  0x82   :  { %2944 = vmatpush.bf16.msra.mxu0 %v5105_v45  ;;  %v5173_v45 = vld [vmem:[#allocation6 + $0x420] sm:$0xff] }
  0x83   :  { %2970 = vmatpush.bf16.msra.mxu2 %v5121_v46  ;;  %v5189_v46 = vld [vmem:[#allocation6 + $0x4a0] sm:$0xff] }
  0x84   :  { %2983 = vmatpush.bf16.msra.mxu3 %v5129_v48  ;;  %v5181_v48 = vld [vmem:[#allocation6 + $0x460] sm:$0xff] }
  0x85   :  { %2957 = vmatpush.bf16.msra.mxu1 %v5113_v54  ;;  %2945 = vmatmul.bf16.vlgmr.msra.gmra.mxu0 %v204_v55  ;;  %v5187_v54 = vld [vmem:[#allocation6 + $0x490] sm:$0xff] }
  0x86   :  { %2989 = vmatpush.bf16.msrb.mxu0 %v5144_v49  ;;  %2971 = vmatmul.bf16.vlgmr.msra.gmra.mxu2 %v206_v57  ;;  %v5172_v49 = vld [vmem:[#allocation6 + $0x418] sm:$0xff]  ;;  %v5195_v55 = vld [vmem:[#allocation6 + $0x4d0] sm:$0xff]  ;;  %v5170_v57 = vld [vmem:[#allocation6 + $0x408] sm:$0xff] }
  0x87   :  { %3015 = vmatpush.bf16.msrb.mxu2 %v5160_v51  ;;  %2984 = vmatmul.bf16.vlgmr.msra.gmra.mxu3 %v207_v59  ;;  %v5196_v51 = vld [vmem:[#allocation6 + $0x4d8] sm:$0xff]  ;;  %v5194_v59 = vld [vmem:[#allocation6 + $0x4c8] sm:$0xff] }
  0x88   :  { %3028 = vmatpush.bf16.msrb.mxu3 %v5168_v52  ;;  %2958 = vmatmul.bf16.vlgmr.msra.gmra.mxu1 %v205_v61  ;;  %v5180_v52 = vld [vmem:[#allocation6 + $0x458] sm:$0xff]  ;;  %v5169_v61 = vld [vmem:[#allocation6 + $0x400] sm:$0xff] }
  0x89   :  { %3002 = vmatpush.bf16.msrb.mxu1 %v5152_v58  ;;  %v5186_v58 = vld [vmem:[#allocation6 + $0x488] sm:$0xff] }
  0x8a   :  { %2990 = vmatpush.bf16.msrb.mxu0 %v5143_v60  ;;  %v5178_v60 = vld [vmem:[#allocation6 + $0x448] sm:$0xff] }
  0x8b   :  { %3016 = vmatpush.bf16.msrb.mxu2 %v5159_v62  ;;  %v5185_v62 = vld [vmem:[#allocation6 + $0x480] sm:$0xff] }
  0x8c   :  { %3029 = vmatpush.bf16.msrb.mxu3 %v5167_v63  ;;  %v5193_v63 = vld [vmem:[#allocation6 + $0x4c0] sm:$0xff] }
  0x8d   :  { %3003 = vmatpush.bf16.msrb.mxu1 %v5151_v0  ;;  %v171_v0 = vld [vmem:[#allocation4 + $0x80] sm:$0xff] }
  0x8e   :  { %2991 = vmatpush.bf16.msrb.mxu0 %v5142_v1  ;;  %v173_v1 = vld [vmem:[#allocation4 + $0x90] sm:$0xff] }
  0x8f   :  { %3017 = vmatpush.bf16.msrb.mxu2 %v5158_v2  ;;  %v5208_v2 = vld [vmem:[#allocation6 + $0x538] sm:$0xff] }
  0x90   :  { %3030 = vmatpush.bf16.msrb.mxu3 %v5166_v3  ;;  %v5224_v3 = vld [vmem:[#allocation6 + $0x5b8] sm:$0xff] }
  0x91   :  { %3004 = vmatpush.bf16.msrb.mxu1 %v5150_v4  ;;  %v174_v4 = vld [vmem:[#allocation4 + $0x98] sm:$0xff] }
  0x92   :  { %2992 = vmatpush.bf16.msrb.mxu0 %v5141_v5  ;;  %v5232_v5 = vld [vmem:[#allocation6 + $0x5f8] sm:$0xff] }
  0x93   :  { %3018 = vmatpush.bf16.msrb.mxu2 %v5157_v6  ;;  %v5177_v6 = vld [vmem:[#allocation6 + $0x440] sm:$0xff] }
  0x94   :  { %3031 = vmatpush.bf16.msrb.mxu3 %v5165_v7  ;;  %v172_v7 = vld [vmem:[#allocation4 + $0x88] sm:$0xff] }
  0x95   :  { %3005 = vmatpush.bf16.msrb.mxu1 %v5149_v8  ;;  %v212_v8 = vpack.c.bf16 %v171_v0, %v171_v0  ;;  %v5239_v0 = vld [vmem:[#allocation6 + $0x630] sm:$0xff] }
  0x96   :  { %2993 = vmatpush.bf16.msrb.mxu0 %v5140_v9  ;;  %v214_v9 = vpack.c.bf16 %v173_v1, %v173_v1  ;;  %v5255_v1 = vld [vmem:[#allocation6 + $0x6b0] sm:$0xff] }
  0x97   :  { %3019 = vmatpush.bf16.msrb.mxu2 %v5156_v10  ;;  %v5216_v10 = vld [vmem:[#allocation6 + $0x578] sm:$0xff] }
  0x98   :  { %3032 = vmatpush.bf16.msrb.mxu3 %v5164_v11  ;;  %v215_v11 = vpack.c.bf16 %v174_v4, %v174_v4  ;;  %v5238_v4 = vld [vmem:[#allocation6 + $0x628] sm:$0xff] }
  0x99   :  { %3006 = vmatpush.bf16.msrb.mxu1 %v5148_v12  ;;  %v213_v12 = vpack.c.bf16 %v172_v7, %v172_v7  ;;  %v5246_v7 = vld [vmem:[#allocation6 + $0x668] sm:$0xff] }
  0x9a   :  { %2994 = vmatpush.bf16.msrb.mxu0 %v5139_v13  ;;  %v5207_v13 = vld [vmem:[#allocation6 + $0x530] sm:$0xff] }
  0x9b   :  { %3020 = vmatpush.bf16.msrb.mxu2 %v5155_v14  ;;  %v5223_v14 = vld [vmem:[#allocation6 + $0x5b0] sm:$0xff] }
  0x9c   :  { %3033 = vmatpush.bf16.msrb.mxu3 %v5163_v15  ;;  %v5231_v15 = vld [vmem:[#allocation6 + $0x5f0] sm:$0xff] }
  0x9d   :  { %3007 = vmatpush.bf16.msrb.mxu1 %v5147_v16  ;;  %v5215_v16 = vld [vmem:[#allocation6 + $0x570] sm:$0xff] }
  0x9e   :  { %2995 = vmatpush.bf16.msrb.mxu0 %v5138_v17  ;;  %v5206_v17 = vld [vmem:[#allocation6 + $0x528] sm:$0xff] }
  0x9f   :  { %3021 = vmatpush.bf16.msrb.mxu2 %v5154_v18  ;;  %v5222_v18 = vld [vmem:[#allocation6 + $0x5a8] sm:$0xff] }
  0xa0   :  { %3034 = vmatpush.bf16.msrb.mxu3 %v5162_v19  ;;  %v5230_v19 = vld [vmem:[#allocation6 + $0x5e8] sm:$0xff] }
  0xa1   :  { %3008 = vmatpush.bf16.msrb.mxu1 %v5146_v20  ;;  %v5214_v20 = vld [vmem:[#allocation6 + $0x568] sm:$0xff] }
  0xa2   :  { %2996 = vmatpush.bf16.msrb.mxu0 %v5137_v21  ;;  %v5205_v21 = vld [vmem:[#allocation6 + $0x520] sm:$0xff] }
  0xa3   :  { %3022 = vmatpush.bf16.msrb.mxu2 %v5153_v22  ;;  %v5221_v22 = vld [vmem:[#allocation6 + $0x5a0] sm:$0xff] }
  0xa4   :  { %3035 = vmatpush.bf16.msrb.mxu3 %v5161_v26  ;;  %v5204_v26 = vld [vmem:[#allocation6 + $0x518] sm:$0xff] }
  0xa5   :  { %3009 = vmatpush.bf16.msrb.mxu1 %v5145_v30  ;;  %2997 = vmatmul.bf16.vlgmr.msrb.gmra.mxu0 %v208_v32  ;;  %v5212_v32 = vld [vmem:[#allocation6 + $0x558] sm:$0xff] }
  0xa6   :  { %3041 = vmatpush.bf16.msra.mxu0 %v5176_v23  ;;  %3023 = vmatmul.bf16.vlgmr.msrb.gmra.mxu2 %v210_v33  ;;  %v5229_v23 = vld [vmem:[#allocation6 + $0x5e0] sm:$0xff] }
  0xa7   :  { %3067 = vmatpush.bf16.msra.mxu2 %v5192_v27  ;;  %3036 = vmatmul.bf16.vlgmr.msrb.gmra.mxu3 %v211_v35 }
  0xa8   :  { %3080 = vmatpush.bf16.msra.mxu3 %v5200_v29  ;;  %3010 = vmatmul.bf16.vlgmr.msrb.gmra.mxu1 %v209_v36  ;;  %v5228_v29 = vld [vmem:[#allocation6 + $0x5d8] sm:$0xff]  ;;  %v5219_v36 = vld [vmem:[#allocation6 + $0x590] sm:$0xff] }
  0xa9   :  { %3054 = vmatpush.bf16.msra.mxu1 %v5184_v34  ;;  %v5203_v34 = vld [vmem:[#allocation6 + $0x510] sm:$0xff] }
  0xaa   :  { %3042 = vmatpush.bf16.msra.mxu0 %v5175_v37  ;;  %v5227_v37 = vld [vmem:[#allocation6 + $0x5d0] sm:$0xff] }
  0xab   :  { %3068 = vmatpush.bf16.msra.mxu2 %v5191_v38 }
  0xac   :  { %3081 = vmatpush.bf16.msra.mxu3 %v5199_v39 }
  0xad   :  { %3055 = vmatpush.bf16.msra.mxu1 %v5183_v40  ;;  %v5211_v40 = vld [vmem:[#allocation6 + $0x550] sm:$0xff] }
  0xae   :  { %3043 = vmatpush.bf16.msra.mxu0 %v5174_v41  ;;  %v5202_v41 = vld [vmem:[#allocation6 + $0x508] sm:$0xff] }
  0xaf   :  { %3069 = vmatpush.bf16.msra.mxu2 %v5190_v42 }
  0xb0   :  { %3082 = vmatpush.bf16.msra.mxu3 %v5198_v43  ;;  %v5218_v43 = vld [vmem:[#allocation6 + $0x588] sm:$0xff] }
  0xb1   :  { %3056 = vmatpush.bf16.msra.mxu1 %v5182_v44  ;;  %v5226_v44 = vld [vmem:[#allocation6 + $0x5c8] sm:$0xff] }
  0xb2   :  { %3044 = vmatpush.bf16.msra.mxu0 %v5173_v45 }
  0xb3   :  { %3070 = vmatpush.bf16.msra.mxu2 %v5189_v46  ;;  %v5210_v46 = vld [vmem:[#allocation6 + $0x548] sm:$0xff] }
  0xb4   :  { %3083 = vmatpush.bf16.msra.mxu3 %v5197_v47  ;;  %v5201_v47 = vld [vmem:[#allocation6 + $0x500] sm:$0xff] }
  0xb5   :  { %3057 = vmatpush.bf16.msra.mxu1 %v5181_v48  ;;  %v5217_v48 = vld [vmem:[#allocation6 + $0x580] sm:$0xff] }
  0xb6   :  { %3045 = vmatpush.bf16.msra.mxu0 %v5172_v49 }
  0xb7   :  { %3071 = vmatpush.bf16.msra.mxu2 %v5188_v50  ;;  %v5225_v50 = vld [vmem:[#allocation6 + $0x5c0] sm:$0xff] }
  0xb8   :  { %3084 = vmatpush.bf16.msra.mxu3 %v5196_v51  ;;  %v175_v51 = vld [vmem:[#allocation4 + $0xa0] sm:$0xff] }
  0xb9   :  { %3058 = vmatpush.bf16.msra.mxu1 %v5180_v52  ;;  %v177_v52 = vld [vmem:[#allocation4 + $0xb0] sm:$0xff] }
  0xba   :  { %3046 = vmatpush.bf16.msra.mxu0 %v5171_v53  ;;  %v5240_v53 = vld [vmem:[#allocation6 + $0x638] sm:$0xff] }
  0xbb   :  { %3072 = vmatpush.bf16.msra.mxu2 %v5187_v54  ;;  %v5256_v54 = vld [vmem:[#allocation6 + $0x6b8] sm:$0xff] }
  0xbc   :  { %3085 = vmatpush.bf16.msra.mxu3 %v5195_v55  ;;  %v178_v55 = vld [vmem:[#allocation4 + $0xb8] sm:$0xff] }
  0xbd   :  { %3059 = vmatpush.bf16.msra.mxu1 %v5179_v56  ;;  %v5264_v56 = vld [vmem:[#allocation6 + $0x6f8] sm:$0xff] }
  0xbe   :  { %3047 = vmatpush.bf16.msra.mxu0 %v5170_v57  ;;  %v5209_v57 = vld [vmem:[#allocation6 + $0x540] sm:$0xff] }
  0xbf   :  { %3073 = vmatpush.bf16.msra.mxu2 %v5186_v58  ;;  %v176_v58 = vld [vmem:[#allocation4 + $0xa8] sm:$0xff] }
  0xc0   :  { %3086 = vmatpush.bf16.msra.mxu3 %v5194_v59  ;;  %v216_v59 = vpack.c.bf16 %v175_v51, %v175_v51 }
  0xc1   :  { %3060 = vmatpush.bf16.msra.mxu1 %v5178_v60  ;;  %v218_v60 = vpack.c.bf16 %v177_v52, %v177_v52  ;;  %v5271_v52 = vld [vmem:[#allocation6 + $0x730] sm:$0xff] }
  0xc2   :  { %3048 = vmatpush.bf16.msra.mxu0 %v5169_v61  ;;  %v2842_v24 = vpop.f32.mrf.mxu0  ;;  %v5248_v61 = vld [vmem:[#allocation6 + $0x678] sm:$0xff] }
  0xc3   :  { %3074 = vmatpush.bf16.msra.mxu2 %v5185_v62  ;;  %v219_v62 = vpack.c.bf16 %v178_v55, %v178_v55  ;;  %v5279_v55 = vld [vmem:[#allocation6 + $0x770] sm:$0xff] }
  0xc4   :  { %3087 = vmatpush.bf16.msra.mxu3 %v5193_v63  ;;  %v217_v63 = vpack.c.bf16 %v176_v58, %v176_v58  ;;  %v5294_v58 = vld [vmem:[#allocation6 + $0x7e8] sm:$0xff] }
  0xc5   :  { %3061 = vmatpush.bf16.msra.mxu1 %v5177_v6  ;;  %3049 = vmatmul.bf16.vlgmr.msra.gmra.mxu0 %v212_v8  ;;  %v2855_v27 = vpop.f32.mrf.mxu1  ;;  %v5262_v6 = vld [vmem:[#allocation6 + $0x6e8] sm:$0xff]  ;;  %v5237_v8 = vld [vmem:[#allocation6 + $0x620] sm:$0xff] }
  0xc6   :  { %3093 = vmatpush.bf16.msrb.mxu0 %v5208_v2  ;;  %3075 = vmatmul.bf16.vlgmr.msra.gmra.mxu2 %v214_v9  ;;  %v2856_v30 = vadd.f32 %v2855_v27, %v2842_v24  ;;  %v5263_v2 = vld [vmem:[#allocation6 + $0x6f0] sm:$0xff]  ;;  %v5253_v9 = vld [vmem:[#allocation6 + $0x6a0] sm:$0xff] }
  0xc7   :  { %3119 = vmatpush.bf16.msrb.mxu2 %v5224_v3  ;;  %3088 = vmatmul.bf16.vlgmr.msra.gmra.mxu3 %v215_v11  ;;  %v5247_v3 = vld [vmem:[#allocation6 + $0x670] sm:$0xff] }
  0xc8   :  { %3132 = vmatpush.bf16.msrb.mxu3 %v5232_v5  ;;  %3062 = vmatmul.bf16.vlgmr.msra.gmra.mxu1 %v213_v12  ;;  %v5254_v5 = vld [vmem:[#allocation6 + $0x6a8] sm:$0xff]  ;;  %v5251_v24 = vld [vmem:[#allocation6 + $0x690] sm:$0xff] }
  0xc9   :  { %3106 = vmatpush.bf16.msrb.mxu1 %v5216_v10  ;;  %v2868_v31 = vpop.f32.mrf.mxu2  ;;  %v5261_v10 = vld [vmem:[#allocation6 + $0x6e0] sm:$0xff] }
  0xca   :  { %3094 = vmatpush.bf16.msrb.mxu0 %v5207_v13  ;;  %v2869_v33 = vadd.f32 %v2868_v31, %v2856_v30  ;;  %v2881_v35 = vpop.f32.mrf.mxu3  ;;  %v2844_v39 = vpop.f32.mrf.mxu0  ;;  %v5245_v13 = vld [vmem:[#allocation6 + $0x660] sm:$0xff]  ;;  %v5234_v30 = vld [vmem:[#allocation6 + $0x608] sm:$0xff] }
  0xcb   :  { %3120 = vmatpush.bf16.msrb.mxu2 %v5223_v14  ;;  %v5250_v31 = vld [vmem:[#allocation6 + $0x688] sm:$0xff]  ;;  %v179_v39 = vld [vmem:[#allocation4 + $0xc0] sm:$0xff] }
  0xcc   :  { %3133 = vmatpush.bf16.msrb.mxu3 %v5231_v15  ;;  %v5710_v38 = vadd.f32 %v2881_v35, %v2869_v33  ;;  %v5236_v15 = vld [vmem:[#allocation6 + $0x618] sm:$0xff] }
  0xcd   :  { %3107 = vmatpush.bf16.msrb.mxu1 %v5215_v16  ;;  %v2857_v42 = vpop.f32.mrf.mxu1 }
  0xce   :  { %3095 = vmatpush.bf16.msrb.mxu0 %v5206_v17  ;;  %v5252_v17 = vld [vmem:[#allocation6 + $0x698] sm:$0xff] }
  0xcf   :  { %3121 = vmatpush.bf16.msrb.mxu2 %v5222_v18  ;;  %v5260_v18 = vld [vmem:[#allocation6 + $0x6d8] sm:$0xff] }
  0xd0   :  { %3134 = vmatpush.bf16.msrb.mxu3 %v5230_v19  ;;  %v5288_v42 = vld [vmem:[#allocation6 + $0x7b8] sm:$0xff] }
  0xd1   :  { %3108 = vmatpush.bf16.msrb.mxu1 %v5214_v20  ;;  %v2870_v45 = vpop.f32.mrf.mxu2  ;;  %v5244_v20 = vld [vmem:[#allocation6 + $0x658] sm:$0xff] }
  0xd2   :  { %3096 = vmatpush.bf16.msrb.mxu0 %v5205_v21  ;;  %v2883_v49 = vpop.f32.mrf.mxu3  ;;  %v5241_v45 = vld [vmem:[#allocation6 + $0x640] sm:$0xff] }
  0xd3   :  { %3122 = vmatpush.bf16.msrb.mxu2 %v5221_v22  ;;  %v5280_v49 = vld [vmem:[#allocation6 + $0x778] sm:$0xff] }
  0xd4   :  { %3135 = vmatpush.bf16.msrb.mxu3 %v5229_v23  ;;  %v5235_v23 = vld [vmem:[#allocation6 + $0x610] sm:$0xff] }
  0xd5   :  { %3109 = vmatpush.bf16.msrb.mxu1 %v5213_v25  ;;  %v5259_v25 = vld [vmem:[#allocation6 + $0x6d0] sm:$0xff] }
  0xd6   :  { %3097 = vmatpush.bf16.msrb.mxu0 %v5204_v26 }
  0xd7   :  { %3123 = vmatpush.bf16.msrb.mxu2 %v5220_v28  ;;  %v5243_v28 = vld [vmem:[#allocation6 + $0x650] sm:$0xff] }
  0xd8   :  { %3136 = vmatpush.bf16.msrb.mxu3 %v5228_v29 }
  0xd9   :  { %3110 = vmatpush.bf16.msrb.mxu1 %v5212_v32  ;;  %v5258_v32 = vld [vmem:[#allocation6 + $0x6c8] sm:$0xff] }
  0xda   :  { %3098 = vmatpush.bf16.msrb.mxu0 %v5203_v34  ;;  %v5242_v34 = vld [vmem:[#allocation6 + $0x648] sm:$0xff] }
  0xdb   :  { %3124 = vmatpush.bf16.msrb.mxu2 %v5219_v36  ;;  %v5233_v36 = vld [vmem:[#allocation6 + $0x600] sm:$0xff] }
  0xdc   :  { %3137 = vmatpush.bf16.msrb.mxu3 %v5227_v37  ;;  %v5249_v37 = vld [vmem:[#allocation6 + $0x680] sm:$0xff] }
  0xdd   :  { %3111 = vmatpush.bf16.msrb.mxu1 %v5211_v40  ;;  %v181_v40 = vld [vmem:[#allocation4 + $0xd0] sm:$0xff] }
  0xde   :  { %3099 = vmatpush.bf16.msrb.mxu0 %v5202_v41  ;;  %v5272_v41 = vld [vmem:[#allocation6 + $0x738] sm:$0xff] }
  0xdf   :  { %3125 = vmatpush.bf16.msrb.mxu2 %v5218_v43  ;;  %v182_v43 = vld [vmem:[#allocation4 + $0xd8] sm:$0xff] }
  0xe0   :  { %3138 = vmatpush.bf16.msrb.mxu3 %v5226_v44  ;;  %v5296_v44 = vld [vmem:[#allocation6 + $0x7f8] sm:$0xff] }
  0xe1   :  { %3112 = vmatpush.bf16.msrb.mxu1 %v5210_v46  ;;  %v180_v46 = vld [vmem:[#allocation4 + $0xc8] sm:$0xff] }
  0xe2   :  { %3100 = vmatpush.bf16.msrb.mxu0 %v5201_v47  ;;  %v2894_v11 = vpop.f32.mrf.mxu0  ;;  %v220_v47 = vpack.c.bf16 %v179_v39, %v179_v39  ;;  %v221_v51 = vpack.c.bf16 %v180_v46, %v180_v46  ;;  %v5326_v46 = vld [vmem:[#allocation6 + $0x8e8] sm:$0xff] }
  0xe3   :  { %3126 = vmatpush.bf16.msrb.mxu2 %v5217_v48  ;;  %v2895_v12 = vadd.f32 %v2894_v11, %v5710_v38  ;;  %v5257_v38 = vld [vmem:[#allocation6 + $0x6c0] sm:$0xff]  ;;  %v222_v48 = vpack.c.bf16 %v181_v40, %v181_v40  ;;  %v5303_v40 = vld [vmem:[#allocation6 + $0x830] sm:$0xff] }
  0xe4   :  { %3139 = vmatpush.bf16.msrb.mxu3 %v5225_v50  ;;  %v223_v50 = vpack.c.bf16 %v182_v43, %v182_v43  ;;  %v5311_v43 = vld [vmem:[#allocation6 + $0x870] sm:$0xff] }
  0xe5   :  { %3113 = vmatpush.bf16.msrb.mxu1 %v5209_v57  ;;  %3101 = vmatmul.bf16.vlgmr.msrb.gmra.mxu0 %v216_v59  ;;  %v2907_v14 = vpop.f32.mrf.mxu1  ;;  %v5286_v57 = vld [vmem:[#allocation6 + $0x7a8] sm:$0xff] }
  0xe6   :  { %3145 = vmatpush.bf16.msra.mxu0 %v5240_v53  ;;  %3127 = vmatmul.bf16.vlgmr.msrb.gmra.mxu2 %v218_v60  ;;  %v2908_v16 = vadd.f32 %v2907_v14, %v2895_v12  ;;  %v5287_v53 = vld [vmem:[#allocation6 + $0x7b0] sm:$0xff]  ;;  %v5278_v59 = vld [vmem:[#allocation6 + $0x768] sm:$0xff] }
  0xe7   :  { %3171 = vmatpush.bf16.msra.mxu2 %v5256_v54  ;;  %3140 = vmatmul.bf16.vlgmr.msrb.gmra.mxu3 %v219_v62  ;;  %v5295_v54 = vld [vmem:[#allocation6 + $0x7f0] sm:$0xff]  ;;  %v5269_v62 = vld [vmem:[#allocation6 + $0x720] sm:$0xff] }
  0xe8   :  { %3184 = vmatpush.bf16.msra.mxu3 %v5264_v56  ;;  %3114 = vmatmul.bf16.vlgmr.msrb.gmra.mxu1 %v217_v63  ;;  %v5270_v56 = vld [vmem:[#allocation6 + $0x728] sm:$0xff]  ;;  %v5285_v63 = vld [vmem:[#allocation6 + $0x7a0] sm:$0xff]  ;;  %v5267_v12 = vld [vmem:[#allocation6 + $0x710] sm:$0xff] }
  0xe9   :  { %3158 = vmatpush.bf16.msra.mxu1 %v5248_v61  ;;  %v2920_v19 = vpop.f32.mrf.mxu2  ;;  %v5283_v14 = vld [vmem:[#allocation6 + $0x790] sm:$0xff] }
  0xea   :  { %3146 = vmatpush.bf16.msra.mxu0 %v5239_v0  ;;  %v2921_v21 = vadd.f32 %v2920_v19, %v2908_v16  ;;  %v2933_v22 = vpop.f32.mrf.mxu3  ;;  %v2896_v27 = vpop.f32.mrf.mxu0  ;;  %v5293_v0 = vld [vmem:[#allocation6 + $0x7e0] sm:$0xff]  ;;  %v5282_v19 = vld [vmem:[#allocation6 + $0x788] sm:$0xff] }
  0xeb   :  { %3172 = vmatpush.bf16.msra.mxu2 %v5255_v1  ;;  %v183_v27 = vld [vmem:[#allocation4 + $0xe0] sm:$0xff] }
  0xec   :  { %3185 = vmatpush.bf16.msra.mxu3 %v5263_v2  ;;  %v2934_v26 = vadd.f32 %v2933_v22, %v2921_v21  ;;  %v5274_v22 = vld [vmem:[#allocation6 + $0x748] sm:$0xff] }
  0xed   :  { %3159 = vmatpush.bf16.msra.mxu1 %v5247_v3  ;;  %v2909_v29 = vpop.f32.mrf.mxu1  ;;  %v5277_v3 = vld [vmem:[#allocation6 + $0x760] sm:$0xff] }
  0xee   :  { %3147 = vmatpush.bf16.msra.mxu0 %v5238_v4  ;;  %v5268_v4 = vld [vmem:[#allocation6 + $0x718] sm:$0xff] }
  0xef   :  { %3173 = vmatpush.bf16.msra.mxu2 %v5254_v5  ;;  %v5284_v5 = vld [vmem:[#allocation6 + $0x798] sm:$0xff] }
  0xf0   :  { %3186 = vmatpush.bf16.msra.mxu3 %v5262_v6  ;;  %v5292_v6 = vld [vmem:[#allocation6 + $0x7d8] sm:$0xff] }
  0xf1   :  { %3160 = vmatpush.bf16.msra.mxu1 %v5246_v7  ;;  %v2922_v33 = vpop.f32.mrf.mxu2  ;;  %v5304_v29 = vld [vmem:[#allocation6 + $0x838] sm:$0xff] }
  0xf2   :  { %3148 = vmatpush.bf16.msra.mxu0 %v5237_v8  ;;  %v2935_v35 = vpop.f32.mrf.mxu3  ;;  %v5273_v33 = vld [vmem:[#allocation6 + $0x740] sm:$0xff] }
  0xf3   :  { %3174 = vmatpush.bf16.msra.mxu2 %v5253_v9  ;;  %v5276_v9 = vld [vmem:[#allocation6 + $0x758] sm:$0xff]  ;;  %v224_v35 = vpack.c.bf16 %v183_v27, %v183_v27 }
  0xf4   :  { %3187 = vmatpush.bf16.msra.mxu3 %v5261_v10 }
  0xf5   :  { %3161 = vmatpush.bf16.msra.mxu1 %v5245_v13 }
  0xf6   :  { %3149 = vmatpush.bf16.msra.mxu0 %v5236_v15  ;;  %v5291_v15 = vld [vmem:[#allocation6 + $0x7d0] sm:$0xff] }
  0xf7   :  { %3175 = vmatpush.bf16.msra.mxu2 %v5252_v17  ;;  %v5275_v17 = vld [vmem:[#allocation6 + $0x750] sm:$0xff] }
  0xf8   :  { %3188 = vmatpush.bf16.msra.mxu3 %v5260_v18  ;;  %v5266_v18 = vld [vmem:[#allocation6 + $0x708] sm:$0xff] }
  0xf9   :  { %3162 = vmatpush.bf16.msra.mxu1 %v5244_v20  ;;  %v5290_v20 = vld [vmem:[#allocation6 + $0x7c8] sm:$0xff] }
  0xfa   :  { %3150 = vmatpush.bf16.msra.mxu0 %v5235_v23 }
  0xfb   :  { %3176 = vmatpush.bf16.msra.mxu2 %v5251_v24  ;;  %v5265_v24 = vld [vmem:[#allocation6 + $0x700] sm:$0xff] }
  0xfc   :  { %3189 = vmatpush.bf16.msra.mxu3 %v5259_v25  ;;  %v5281_v25 = vld [vmem:[#allocation6 + $0x780] sm:$0xff] }
  0xfd   :  { %3163 = vmatpush.bf16.msra.mxu1 %v5243_v28  ;;  %v185_v28 = vld [vmem:[#allocation4 + $0xf0] sm:$0xff] }
  0xfe   :  { %3151 = vmatpush.bf16.msra.mxu0 %v5234_v30  ;;  %v5320_v30 = vld [vmem:[#allocation6 + $0x8b8] sm:$0xff] }
  0xff   :  { %3177 = vmatpush.bf16.msra.mxu2 %v5250_v31  ;;  %v186_v31 = vld [vmem:[#allocation4 + $0xf8] sm:$0xff] }
 0x100   :  { %3190 = vmatpush.bf16.msra.mxu3 %v5258_v32  ;;  %v5328_v32 = vld [vmem:[#allocation6 + $0x8f8] sm:$0xff] }
 0x101   :  { %3164 = vmatpush.bf16.msra.mxu1 %v5242_v34  ;;  %v184_v34 = vld [vmem:[#allocation4 + $0xe8] sm:$0xff] }
 0x102   :  { %3152 = vmatpush.bf16.msra.mxu0 %v5233_v36  ;;  %v2946_v60 = vpop.f32.mrf.mxu0  ;;  %v226_v36 = vpack.c.bf16 %v185_v28, %v185_v28  ;;  %v225_v39 = vpack.c.bf16 %v184_v34, %v184_v34  ;;  %v5335_v28 = vld [vmem:[#allocation6 + $0x930] sm:$0xff]  ;;  %v5358_v34 = vld [vmem:[#allocation6 + $0x9e8] sm:$0xff] }
 0x103   :  { %3178 = vmatpush.bf16.msra.mxu2 %v5249_v37  ;;  %v2947_v61 = vadd.f32 %v2946_v60, %v2934_v26  ;;  %v5289_v26 = vld [vmem:[#allocation6 + $0x7c0] sm:$0xff]  ;;  %v5312_v37 = vld [vmem:[#allocation6 + $0x878] sm:$0xff] }
 0x104   :  { %3191 = vmatpush.bf16.msra.mxu3 %v5257_v38  ;;  %v227_v38 = vpack.c.bf16 %v186_v31, %v186_v31  ;;  %v5343_v31 = vld [vmem:[#allocation6 + $0x970] sm:$0xff] }
 0x105   :  { %3165 = vmatpush.bf16.msra.mxu1 %v5241_v45  ;;  %3153 = vmatmul.bf16.vlgmr.msra.gmra.mxu0 %v220_v47  ;;  %v2959_v1 = vpop.f32.mrf.mxu1  ;;  %v5318_v45 = vld [vmem:[#allocation6 + $0x8a8] sm:$0xff] }
 0x106   :  { %3197 = vmatpush.bf16.msrb.mxu0 %v5272_v41  ;;  %3179 = vmatmul.bf16.vlgmr.msra.gmra.mxu2 %v222_v48  ;;  %v2960_v2 = vadd.f32 %v2959_v1, %v2947_v61  ;;  %v5319_v41 = vld [vmem:[#allocation6 + $0x8b0] sm:$0xff]  ;;  %v5310_v47 = vld [vmem:[#allocation6 + $0x868] sm:$0xff] }
 0x107   :  { %3223 = vmatpush.bf16.msrb.mxu2 %v5288_v42  ;;  %3192 = vmatmul.bf16.vlgmr.msra.gmra.mxu3 %v223_v50  ;;  %v5327_v42 = vld [vmem:[#allocation6 + $0x8f0] sm:$0xff]  ;;  %v5301_v50 = vld [vmem:[#allocation6 + $0x820] sm:$0xff] }
 0x108   :  { %3236 = vmatpush.bf16.msrb.mxu3 %v5296_v44  ;;  %3166 = vmatmul.bf16.vlgmr.msra.gmra.mxu1 %v221_v51  ;;  %v5302_v44 = vld [vmem:[#allocation6 + $0x828] sm:$0xff]  ;;  %v5317_v51 = vld [vmem:[#allocation6 + $0x8a0] sm:$0xff]  ;;  %v5299_v1 = vld [vmem:[#allocation6 + $0x810] sm:$0xff] }
 0x109   :  { %3210 = vmatpush.bf16.msrb.mxu1 %v5280_v49  ;;  %v2972_v7 = vpop.f32.mrf.mxu2 }
 0x10a   :  { %3198 = vmatpush.bf16.msrb.mxu0 %v5271_v52  ;;  %v2973_v8 = vadd.f32 %v2972_v7, %v2960_v2  ;;  %v2985_v10 = vpop.f32.mrf.mxu3  ;;  %v2948_v11 = vpop.f32.mrf.mxu0  ;;  %v5325_v52 = vld [vmem:[#allocation6 + $0x8e0] sm:$0xff]  ;;  %v5315_v2 = vld [vmem:[#allocation6 + $0x890] sm:$0xff]  ;;  %v5314_v7 = vld [vmem:[#allocation6 + $0x888] sm:$0xff] }
 0x10b   :  { %3224 = vmatpush.bf16.msrb.mxu2 %v5287_v53  ;;  %v5306_v11 = vld [vmem:[#allocation6 + $0x848] sm:$0xff] }
 0x10c   :  { %3237 = vmatpush.bf16.msrb.mxu3 %v5295_v54  ;;  %v2986_v13 = vadd.f32 %v2985_v10, %v2973_v8  ;;  %v5322_v8 = vld [vmem:[#allocation6 + $0x8c8] sm:$0xff] }
 0x10d   :  { %3211 = vmatpush.bf16.msrb.mxu1 %v5279_v55  ;;  %v2961_v16 = vpop.f32.mrf.mxu1  ;;  %v5309_v55 = vld [vmem:[#allocation6 + $0x860] sm:$0xff] }
 0x10e   :  { %3199 = vmatpush.bf16.msrb.mxu0 %v5270_v56  ;;  %v5300_v56 = vld [vmem:[#allocation6 + $0x818] sm:$0xff]  ;;  %v189_v16 = vld [vmem:[#allocation4 + $0x110] sm:$0xff] }
 0x10f   :  { %3225 = vmatpush.bf16.msrb.mxu2 %v5286_v57  ;;  %v5316_v57 = vld [vmem:[#allocation6 + $0x898] sm:$0xff] }
 0x110   :  { %3238 = vmatpush.bf16.msrb.mxu3 %v5294_v58  ;;  %v5324_v58 = vld [vmem:[#allocation6 + $0x8d8] sm:$0xff] }
 0x111   :  { %3212 = vmatpush.bf16.msrb.mxu1 %v5278_v59  ;;  %v2974_v21 = vpop.f32.mrf.mxu2 }
 0x112   :  { %3200 = vmatpush.bf16.msrb.mxu0 %v5269_v62  ;;  %v2987_v23 = vpop.f32.mrf.mxu3  ;;  %v5308_v62 = vld [vmem:[#allocation6 + $0x858] sm:$0xff]  ;;  %v5305_v21 = vld [vmem:[#allocation6 + $0x840] sm:$0xff] }
 0x113   :  { %3226 = vmatpush.bf16.msrb.mxu2 %v5285_v63 }
 0x114   :  { %3239 = vmatpush.bf16.msrb.mxu3 %v5293_v0 }
 0x115   :  { %3213 = vmatpush.bf16.msrb.mxu1 %v5277_v3  ;;  %v5323_v3 = vld [vmem:[#allocation6 + $0x8d0] sm:$0xff] }
 0x116   :  { %3201 = vmatpush.bf16.msrb.mxu0 %v5268_v4 }
 0x117   :  { %3227 = vmatpush.bf16.msrb.mxu2 %v5284_v5  ;;  %v5307_v5 = vld [vmem:[#allocation6 + $0x850] sm:$0xff] }
 0x118   :  { %3240 = vmatpush.bf16.msrb.mxu3 %v5292_v6  ;;  %v5298_v6 = vld [vmem:[#allocation6 + $0x808] sm:$0xff] }
 0x119   :  { %3214 = vmatpush.bf16.msrb.mxu1 %v5276_v9 }
 0x11a   :  { %3202 = vmatpush.bf16.msrb.mxu0 %v5267_v12  ;;  %v5297_v12 = vld [vmem:[#allocation6 + $0x800] sm:$0xff] }
 0x11b   :  { %3228 = vmatpush.bf16.msrb.mxu2 %v5283_v14  ;;  %v5321_v14 = vld [vmem:[#allocation6 + $0x8c0] sm:$0xff] }
 0x11c   :  { %3241 = vmatpush.bf16.msrb.mxu3 %v5291_v15  ;;  %v187_v15 = vld [vmem:[#allocation4 + $0x100] sm:$0xff] }
 0x11d   :  { %3215 = vmatpush.bf16.msrb.mxu1 %v5275_v17  ;;  %v5336_v17 = vld [vmem:[#allocation6 + $0x938] sm:$0xff]  ;;  %v228_v23 = vpack.c.bf16 %v187_v15, %v187_v15 }
 0x11e   :  { %3203 = vmatpush.bf16.msrb.mxu0 %v5266_v18  ;;  %v5352_v18 = vld [vmem:[#allocation6 + $0x9b8] sm:$0xff] }
 0x11f   :  { %3229 = vmatpush.bf16.msrb.mxu2 %v5282_v19  ;;  %v190_v19 = vld [vmem:[#allocation4 + $0x118] sm:$0xff] }
 0x120   :  { %3242 = vmatpush.bf16.msrb.mxu3 %v5290_v20  ;;  %v5360_v20 = vld [vmem:[#allocation6 + $0x9f8] sm:$0xff] }
 0x121   :  { %3216 = vmatpush.bf16.msrb.mxu1 %v5274_v22  ;;  %v188_v22 = vld [vmem:[#allocation4 + $0x108] sm:$0xff] }
 0x122   :  { %3204 = vmatpush.bf16.msrb.mxu0 %v5265_v24  ;;  %v2998_v48 = vpop.f32.mrf.mxu0  ;;  %v230_v24 = vpack.c.bf16 %v189_v16, %v189_v16  ;;  %v229_v27 = vpack.c.bf16 %v188_v22, %v188_v22 }
 0x123   :  { %3230 = vmatpush.bf16.msrb.mxu2 %v5281_v25  ;;  %v2999_v49 = vadd.f32 %v2998_v48, %v2986_v13  ;;  %v5313_v13 = vld [vmem:[#allocation6 + $0x880] sm:$0xff]  ;;  %v5344_v25 = vld [vmem:[#allocation6 + $0x978] sm:$0xff] }
 0x124   :  { %3243 = vmatpush.bf16.msrb.mxu3 %v5289_v26  ;;  %v231_v26 = vpack.c.bf16 %v190_v19, %v190_v19 }
 0x125   :  { %3217 = vmatpush.bf16.msrb.mxu1 %v5273_v33  ;;  %3205 = vmatmul.bf16.vlgmr.msrb.gmra.mxu0 %v224_v35  ;;  %v3011_v53 = vpop.f32.mrf.mxu1  ;;  %v5350_v33 = vld [vmem:[#allocation6 + $0x9a8] sm:$0xff] }
 0x126   :  { %3249 = vmatpush.bf16.msra.mxu0 %v5304_v29  ;;  %3231 = vmatmul.bf16.vlgmr.msrb.gmra.mxu2 %v226_v36  ;;  %v3012_v54 = vadd.f32 %v3011_v53, %v2999_v49  ;;  %v5351_v29 = vld [vmem:[#allocation6 + $0x9b0] sm:$0xff]  ;;  %v5342_v35 = vld [vmem:[#allocation6 + $0x968] sm:$0xff] }
 0x127   :  { %3275 = vmatpush.bf16.msra.mxu2 %v5320_v30  ;;  %3244 = vmatmul.bf16.vlgmr.msrb.gmra.mxu3 %v227_v38  ;;  %v5359_v30 = vld [vmem:[#allocation6 + $0x9f0] sm:$0xff]  ;;  %v5333_v38 = vld [vmem:[#allocation6 + $0x920] sm:$0xff] }
 0x128   :  { %3288 = vmatpush.bf16.msra.mxu3 %v5328_v32  ;;  %3218 = vmatmul.bf16.vlgmr.msrb.gmra.mxu1 %v225_v39  ;;  %v5334_v32 = vld [vmem:[#allocation6 + $0x928] sm:$0xff]  ;;  %v5349_v39 = vld [vmem:[#allocation6 + $0x9a0] sm:$0xff]  ;;  %v5331_v53 = vld [vmem:[#allocation6 + $0x910] sm:$0xff] }
 0x129   :  { %3262 = vmatpush.bf16.msra.mxu1 %v5312_v37  ;;  %v3024_v59 = vpop.f32.mrf.mxu2 }
 0x12a   :  { %3250 = vmatpush.bf16.msra.mxu0 %v5303_v40  ;;  %v3025_v60 = vadd.f32 %v3024_v59, %v3012_v54  ;;  %v3037_v61 = vpop.f32.mrf.mxu3  ;;  %v3000_v63 = vpop.f32.mrf.mxu0  ;;  %v5357_v40 = vld [vmem:[#allocation6 + $0x9e0] sm:$0xff]  ;;  %v5347_v54 = vld [vmem:[#allocation6 + $0x990] sm:$0xff]  ;;  %v5346_v59 = vld [vmem:[#allocation6 + $0x988] sm:$0xff] }
 0x12b   :  { %3276 = vmatpush.bf16.msra.mxu2 %v5319_v41  ;;  %v5338_v63 = vld [vmem:[#allocation6 + $0x948] sm:$0xff] }
 0x12c   :  { %3289 = vmatpush.bf16.msra.mxu3 %v5327_v42  ;;  %v5713_v0 = vadd.f32 %v3037_v61, %v3025_v60  ;;  %v5354_v60 = vld [vmem:[#allocation6 + $0x9c8] sm:$0xff] }
 0x12d   :  { %3263 = vmatpush.bf16.msra.mxu1 %v5311_v43  ;;  %v3013_v4 = vpop.f32.mrf.mxu1  ;;  %v5341_v43 = vld [vmem:[#allocation6 + $0x960] sm:$0xff] }
 0x12e   :  { %3251 = vmatpush.bf16.msra.mxu0 %v5302_v44  ;;  %v5332_v44 = vld [vmem:[#allocation6 + $0x918] sm:$0xff]  ;;  %v193_v4 = vld [vmem:[#allocation4 + $0x130] sm:$0xff] }
 0x12f   :  { %3277 = vmatpush.bf16.msra.mxu2 %v5318_v45  ;;  %v5348_v45 = vld [vmem:[#allocation6 + $0x998] sm:$0xff] }
 0x130   :  { %3290 = vmatpush.bf16.msra.mxu3 %v5326_v46  ;;  %v5356_v46 = vld [vmem:[#allocation6 + $0x9d8] sm:$0xff] }
 0x131   :  { %3264 = vmatpush.bf16.msra.mxu1 %v5310_v47  ;;  %v3026_v9 = vpop.f32.mrf.mxu2 }
 0x132   :  { %3252 = vmatpush.bf16.msra.mxu0 %v5301_v50  ;;  %v3039_v10 = vpop.f32.mrf.mxu3  ;;  %v5340_v50 = vld [vmem:[#allocation6 + $0x958] sm:$0xff]  ;;  %v192_v9 = vld [vmem:[#allocation4 + $0x128] sm:$0xff] }
 0x133   :  { %3278 = vmatpush.bf16.msra.mxu2 %v5317_v51  ;;  %v234_v10 = vpack.c.bf16 %v193_v4, %v193_v4  ;;  %v5617_v4 = vmov 8.0  }
 0x134   :  { %3291 = vmatpush.bf16.msra.mxu3 %v5325_v52  ;;  %5397 = vrcp.f32 %v5617_v4 }
 0x135   :  { %3265 = vmatpush.bf16.msra.mxu1 %v5309_v55  ;;  %v5355_v55 = vld [vmem:[#allocation6 + $0x9d0] sm:$0xff] }
 0x136   :  { %3253 = vmatpush.bf16.msra.mxu0 %v5300_v56 }
 0x137   :  { %3279 = vmatpush.bf16.msra.mxu2 %v5316_v57  ;;  %v5339_v57 = vld [vmem:[#allocation6 + $0x950] sm:$0xff] }
 0x138   :  { %3292 = vmatpush.bf16.msra.mxu3 %v5324_v58  ;;  %v5330_v58 = vld [vmem:[#allocation6 + $0x908] sm:$0xff] }
 0x139   :  { %3266 = vmatpush.bf16.msra.mxu1 %v5308_v62 }
 0x13a   :  { %3254 = vmatpush.bf16.msra.mxu0 %v5299_v1  ;;  %v5345_v1 = vld [vmem:[#allocation6 + $0x980] sm:$0xff] }
 0x13b   :  { %3280 = vmatpush.bf16.msra.mxu2 %v5315_v2  ;;  %v191_v2 = vld [vmem:[#allocation4 + $0x120] sm:$0xff] }
 0x13c   :  { %3293 = vmatpush.bf16.msra.mxu3 %v5323_v3  ;;  %v5353_v3 = vld [vmem:[#allocation6 + $0x9c0] sm:$0xff] }
 0x13d   :  { %3267 = vmatpush.bf16.msra.mxu1 %v5307_v5  ;;  %v194_v5 = vld [vmem:[#allocation4 + $0x138] sm:$0xff] }
 0x13e   :  { %3255 = vmatpush.bf16.msra.mxu0 %v5298_v6  ;;  %v5364_v6 = vld [vmem:[#allocation6 + $0xa18] sm:$0xff] }
 0x13f   :  { %3281 = vmatpush.bf16.msra.mxu2 %v5314_v7  ;;  %v5337_v7 = vld [vmem:[#allocation6 + $0x940] sm:$0xff] }
 0x140   :  { %3294 = vmatpush.bf16.msra.mxu3 %v5322_v8  ;;  %v232_v8 = vpack.c.bf16 %v191_v2, %v191_v2 }
 0x141   :  { %3268 = vmatpush.bf16.msra.mxu1 %v5306_v11  ;;  %v235_v11 = vpack.c.bf16 %v194_v5, %v194_v5 }
 0x142   :  { %3256 = vmatpush.bf16.msra.mxu0 %v5297_v12  ;;  %v3050_v36 = vpop.f32.mrf.mxu0  ;;  %v233_v12 = vpack.c.bf16 %v192_v9, %v192_v9  ;;  %v5398_v9 = vpop.eup %5397 }
 0x143   :  { %3282 = vmatpush.bf16.msra.mxu2 %v5313_v13  ;;  %v3051_v37 = vadd.f32 %v3050_v36, %v5713_v0  ;;  %v5329_v0 = vld [vmem:[#allocation6 + $0x900] sm:$0xff]  ;;  %v5363_v13 = vld [vmem:[#allocation6 + $0xa10] sm:$0xff]  ;;  %vm3395_vm1 = vweird.f32 %v5398_v9 }
 0x144   :  { %3295 = vmatpush.bf16.msra.mxu3 %v5321_v14  ;;  %v5362_v14 = vld [vmem:[#allocation6 + $0xa08] sm:$0xff] }
 0x145   :  { %3269 = vmatpush.bf16.msra.mxu1 %v5305_v21  ;;  %3257 = vmatmul.bf16.vlgmr.msra.gmra.mxu0 %v228_v23  ;;  %v3063_v41 = vpop.f32.mrf.mxu1 }
 0x146   :  { %3301 = vmatpush.bf16.msrb.mxu0 %v5336_v17  ;;  %3283 = vmatmul.bf16.vlgmr.msra.gmra.mxu2 %v230_v24  ;;  %v3064_v42 = vadd.f32 %v3063_v41, %v3051_v37  ;;  %v5361_v17 = vld [vmem:[#allocation6 + $0xa00] sm:$0xff] }
 0x147   :  { %3327 = vmatpush.bf16.msrb.mxu2 %v5352_v18  ;;  %3296 = vmatmul.bf16.vlgmr.msra.gmra.mxu3 %v231_v26 }
 0x148   :  { %3340 = vmatpush.bf16.msrb.mxu3 %v5360_v20  ;;  %3270 = vmatmul.bf16.vlgmr.msra.gmra.mxu1 %v229_v27  ;;  %v195_v20 = vld [vmem:[#allocation4 + $0x140] sm:$0xff] }
 0x149   :  { %3314 = vmatpush.bf16.msrb.mxu1 %v5344_v25  ;;  %v3076_v47 = vpop.f32.mrf.mxu2  ;;  %v236_v22 = vpack.c.bf16 %v195_v20, %v195_v20  ;;  %v5372_v20 = vld [vmem:[%s5780_s4 + $0x38] sm:$0xff] }
 0x14a   :  { %3302 = vmatpush.bf16.msrb.mxu0 %v5335_v28  ;;  %v3077_v48 = vadd.f32 %v3076_v47, %v3064_v42  ;;  %v3089_v49 = vpop.f32.mrf.mxu3  ;;  %v3052_v51 = vpop.f32.mrf.mxu0 }
 0x14b   :  { %3328 = vmatpush.bf16.msrb.mxu2 %v5351_v29 }
 0x14c   :  { %3341 = vmatpush.bf16.msrb.mxu3 %v5359_v30  ;;  %v3090_v52 = vadd.f32 %v3089_v49, %v3077_v48 }
 0x14d   :  { %3315 = vmatpush.bf16.msrb.mxu1 %v5343_v31  ;;  %v3065_v56 = vpop.f32.mrf.mxu1 }
 0x14e   :  { %3303 = vmatpush.bf16.msrb.mxu0 %v5334_v32 }
 0x14f   :  { %3329 = vmatpush.bf16.msrb.mxu2 %v5350_v33 }
 0x150   :  { %3342 = vmatpush.bf16.msrb.mxu3 %v5358_v34 }
 0x151   :  { %3316 = vmatpush.bf16.msrb.mxu1 %v5342_v35  ;;  %v3078_v61 = vpop.f32.mrf.mxu2 }
 0x152   :  { %3304 = vmatpush.bf16.msrb.mxu0 %v5333_v38  ;;  %v3091_v62 = vpop.f32.mrf.mxu3 }
 0x153   :  { %3330 = vmatpush.bf16.msrb.mxu2 %v5349_v39 }
 0x154   :  { %3343 = vmatpush.bf16.msrb.mxu3 %v5357_v40 }
 0x155   :  { %3317 = vmatpush.bf16.msrb.mxu1 %v5341_v43 }
 0x156   :  { %3305 = vmatpush.bf16.msrb.mxu0 %v5332_v44 }
 0x157   :  { %3331 = vmatpush.bf16.msrb.mxu2 %v5348_v45 }
 0x158   :  { %3344 = vmatpush.bf16.msrb.mxu3 %v5356_v46 }
 0x159   :  { %3318 = vmatpush.bf16.msrb.mxu1 %v5340_v50 }
 0x15a   :  { %3306 = vmatpush.bf16.msrb.mxu0 %v5331_v53 }
 0x15b   :  { %3332 = vmatpush.bf16.msrb.mxu2 %v5347_v54 }
 0x15c   :  { %3345 = vmatpush.bf16.msrb.mxu3 %v5355_v55 }
 0x15d   :  { %3319 = vmatpush.bf16.msrb.mxu1 %v5339_v57 }
 0x15e   :  { %3307 = vmatpush.bf16.msrb.mxu0 %v5330_v58 }
 0x15f   :  { %3333 = vmatpush.bf16.msrb.mxu2 %v5346_v59 }
 0x160   :  { %3346 = vmatpush.bf16.msrb.mxu3 %v5354_v60 }
 0x161   :  { %3320 = vmatpush.bf16.msrb.mxu1 %v5338_v63 }
 0x162   :  { %3308 = vmatpush.bf16.msrb.mxu0 %v5329_v0  ;;  %v3102_v15 = vpop.f32.mrf.mxu0 }
 0x163   :  { %3334 = vmatpush.bf16.msrb.mxu2 %v5345_v1  ;;  %v3103_v16 = vadd.f32 %v3102_v15, %v3090_v52 }
 0x164   :  { %3347 = vmatpush.bf16.msrb.mxu3 %v5353_v3 }
 0x165   :  { %3321 = vmatpush.bf16.msrb.mxu1 %v5337_v7  ;;  %3309 = vmatmul.bf16.vlgmr.msrb.gmra.mxu0 %v232_v8  ;;  %v3115_v18 = vpop.f32.mrf.mxu1 }
 0x166   :  { %3357 = vmatpush.bf16.msra.mxu0 %v5364_v6  ;;  %3335 = vmatmul.bf16.vlgmr.msrb.gmra.mxu2 %v234_v10  ;;  %v3116_v19 = vadd.f32 %v3115_v18, %v3103_v16 }
 0x167   :  { %3348 = vmatmul.bf16.vlgmr.msrb.gmra.mxu3 %v235_v11 }
 0x168   :  { %3322 = vmatmul.bf16.vlgmr.msrb.gmra.mxu1 %v233_v12 }
 0x169   :  { %v3128_v21 = vpop.f32.mrf.mxu2  ;;  %3493 = vmatpush.bf16.msra.mxu1 %v5372_v20  ;;  %v5373_v20 = vld [vmem:[%s5783_s7] sm:$0xff] }
 0x16a   :  { %3358 = vmatpush.bf16.msra.mxu0 %v5363_v13  ;;  %v3129_v23 = vadd.f32 %v3128_v21, %v3116_v19  ;;  %v3141_v24 = vpop.f32.mrf.mxu3  ;;  %v3104_v25 = vpop.f32.mrf.mxu0  ;;  %v3391_v13 = vmul.f32 8.0, %v5398_v9 }
 0x16c   :  { %v3142_v26 = vadd.f32 %v3141_v24, %v3129_v23  ;;  %v3392_v18 = vsub.f32 1.0, %v3391_v13  ;;  %v5371_v24 = vld [vmem:[%s5780_s4 + $0x30] sm:$0xff] }
 0x16d   :  { %v3117_v27 = vpop.f32.mrf.mxu1  ;;  %3494 = vmatpush.bf16.msra.mxu1 %v5371_v24 }
 0x16e   :  { %3359 = vmatpush.bf16.msra.mxu0 %v5362_v14 }
 0x171   :  { %v3130_v28 = vpop.f32.mrf.mxu2 }
 0x172   :  { %3360 = vmatpush.bf16.msra.mxu0 %v5361_v17  ;;  %v3143_v29 = vpop.f32.mrf.mxu3 }
 0x173   :  { %v5370_v29 = vld [vmem:[%s5780_s4 + $0x28] sm:$0xff] }
 0x174   :  { %3495 = vmatpush.bf16.msra.mxu1 %v5370_v29 }
 0x175   :  { %4982 = vmatmul.msk.bf16.vlgmr.msra.gmra.mxu0 %vm2829_vm0, %v236_v22  ;;  %v3393_v22 = vmul.f32 %v5398_v9, %v3392_v18 }
 0x182   :  { %v3154_v30 = vpop.f32.mrf.mxu0 }
 0x183   :  { %v3155_v31 = vadd.f32 %v3154_v30, %v3142_v26  ;;  %v3394_v26 = vadd.f32 %v5398_v9, %v3393_v22 }
 0x185   :  { %v3167_v32 = vpop.f32.mrf.mxu1 }
 0x186   :  { %v3168_v33 = vadd.f32 %v3167_v32, %v3155_v31  ;;  %v5726_v31 = vsel %vm3395_vm1, %v5398_v9, %v3394_v26 }
 0x189   :  { %v3180_v34 = vpop.f32.mrf.mxu2 }
 0x18a   :  { %v3181_v35 = vadd.f32 %v3180_v34, %v3168_v33  ;;  %v3193_v36 = vpop.f32.mrf.mxu3  ;;  %v3156_v37 = vpop.f32.mrf.mxu0  ;;  %v5369_v33 = vld [vmem:[%s5780_s4 + $0x20] sm:$0xff] }
 0x18b   :  { %3496 = vmatpush.bf16.msra.mxu1 %v5369_v33 }
 0x18c   :  { %v3194_v38 = vadd.f32 %v3193_v36, %v3181_v35  ;;  %v5368_v36 = vld [vmem:[%s5780_s4 + $0x18] sm:$0xff] }
 0x18d   :  { %v3169_v39 = vpop.f32.mrf.mxu1 }
 0x18e   :  { %v5367_v39 = vld [vmem:[%s5780_s4 + $0x10] sm:$0xff] }
 0x18f   :  { %3497 = vmatpush.bf16.msra.mxu1 %v5368_v36 }
 0x191   :  { %v3182_v40 = vpop.f32.mrf.mxu2 }
 0x192   :  { %v3195_v41 = vpop.f32.mrf.mxu3 }
 0x193   :  { %3498 = vmatpush.bf16.msra.mxu1 %v5367_v39 }
 0x1a2   :  { %v3206_v42 = vpop.f32.mrf.mxu0 }
 0x1a3   :  { %v3207_v55 = vadd.f32 %v3206_v42, %v3194_v38  ;;  %v5366_v42 = vld [vmem:[%s5780_s4 + $0x8] sm:$0xff] }
 0x1a4   :  { %3499 = vmatpush.bf16.msra.mxu1 %v5366_v42 }
 0x1a5   :  { %v3219_v43 = vpop.f32.mrf.mxu1 }
 0x1a6   :  { %v3220_v57 = vadd.f32 %v3219_v43, %v3207_v55  ;;  %v5390_v55 = vld [vmem:[#allocation8] ss:$0 sm:$0xff] }
 0x1a9   :  { %v3232_v44 = vpop.f32.mrf.mxu2 }
 0x1aa   :  { %v3245_v45 = vpop.f32.mrf.mxu3  ;;  %v3208_v46 = vpop.f32.mrf.mxu0  ;;  %v3233_v60 = vadd.f32 %v3232_v44, %v3220_v57  ;;  %v5365_v44 = vld [vmem:[%s5780_s4] sm:$0xff] }
 0x1ab   :  { %3500 = vmatpush.bf16.msra.mxu1 %v5365_v44 }
 0x1ac   :  { %v3246_v61 = vadd.f32 %v3245_v45, %v3233_v60 }
 0x1ad   :  { %v3221_v47 = vpop.f32.mrf.mxu1 }
 0x1b1   :  { %v3234_v48 = vpop.f32.mrf.mxu2 }
 0x1b2   :  { %v3247_v49 = vpop.f32.mrf.mxu3 }
 0x1c2   :  { %v3258_v50 = vpop.f32.mrf.mxu0 }
 0x1c3   :  { %v3259_v62 = vadd.f32 %v3258_v50, %v3246_v61 }
 0x1c5   :  { %v3271_v51 = vpop.f32.mrf.mxu1 }
 0x1c6   :  { %v3272_v63 = vadd.f32 %v3271_v51, %v3259_v62 }
 0x1c9   :  { %v3284_v52 = vpop.f32.mrf.mxu2 }
 0x1ca   :  { %v3297_v53 = vpop.f32.mrf.mxu3  ;;  %v3260_v54 = vpop.f32.mrf.mxu0  ;;  %v3285_v0 = vadd.f32 %v3284_v52, %v3272_v63 }
 0x1cc   :  { %v3298_v2 = vadd.f32 %v3297_v53, %v3285_v0 }
 0x1cd   :  { %v3273_v56 = vpop.f32.mrf.mxu1 }
 0x1d1   :  { %v3286_v58 = vpop.f32.mrf.mxu2 }
 0x1d2   :  { %v3299_v59 = vpop.f32.mrf.mxu3  ;;  %v5391_v58 = vld [vmem:[#allocation9] ss:$0 sm:$0xff] }
 0x1e2   :  { %v3310_v1 = vpop.f32.mrf.mxu0 }
 0x1e3   :  { %v3311_v5 = vadd.f32 %v3310_v1, %v3298_v2 }
 0x1e5   :  { %v3323_v3 = vpop.f32.mrf.mxu1 }
 0x1e6   :  { %v3324_v10 = vadd.f32 %v3323_v3, %v3311_v5 }
 0x1e9   :  { %v3336_v6 = vpop.f32.mrf.mxu2 }
 0x1ea   :  { %v3349_v7 = vpop.f32.mrf.mxu3  ;;  %v3312_v8 = vpop.f32.mrf.mxu0  ;;  %v3337_v11 = vadd.f32 %v3336_v6, %v3324_v10  ;;  %v5376_v10 = vld [vmem:[%s5783_s7 + $0x18] sm:$0xff] }
 0x1eb   :  { %3587 = vmatpush.bf16.msra.mxu2 %v5376_v10 }
 0x1ec   :  { %v3350_v14 = vadd.f32 %v3349_v7, %v3337_v11 }
 0x1ed   :  { %v3325_v12 = vpop.f32.mrf.mxu1 }
 0x1f1   :  { %v3338_v15 = vpop.f32.mrf.mxu2 }
 0x1f2   :  { %v3351_v16 = vpop.f32.mrf.mxu3  ;;  %v3362_v17 = vpop.f32.mrf.mxu0 }
 0x1f3   :  { %v3363_v19 = vadd.f32 %v3362_v17, %v3350_v14  ;;  %v5375_v14 = vld [vmem:[%s5783_s7 + $0x10] sm:$0xff]  ;;  %v5374_v17 = vld [vmem:[%s5783_s7 + $0x8] sm:$0xff] }
 0x1f4   :  { %3588 = vmatpush.bf16.msra.mxu2 %v5375_v14 }
 0x1f5   :  { %v3384_v21 = vrot.slane %v3363_v19, 4 }
 0x1f7   :  { %v3385_v23 = vadd.f32 %v3384_v21, %v3363_v19 }
 0x1f8   :  { %3589 = vmatpush.bf16.msra.mxu2 %v5374_v17 }
 0x1f9   :  { %v3386_v25 = vrot.slane %v3385_v23, 2 }
 0x1fa   :  { %v3364_v27 = vpop.f32.mrf.mxu0 }
 0x1fb   :  { %v3387_v28 = vadd.f32 %v3386_v25, %v3385_v23 }
 0x1fc   :  { %3590 = vmatpush.bf16.msra.mxu2 %v5373_v20 }
 0x1fd   :  { %v3388_v30 = vrot.slane %v3387_v28, 1 }
 0x1ff   :  { %v3389_v32 = vadd.f32 %v3388_v30, %v3387_v28  ;;  %v5392_v30 = vld [vmem:[#allocation11] ss:$0 sm:$0xff] }
 0x201   :  { %v3397_v34 = vmul.f32 %v5726_v31, %v3389_v32 }
 0x203   :  { %v3398_v35 = vsub.f32 %v3363_v19, %v3397_v34  ;;  %v5393_v34 = vld [vmem:[#allocation12] ss:$0 sm:$0xff] }
 0x205   :  { %v3399_v37 = vmul.f32 %v3398_v35, %v3398_v35 }
 0x207   :  { %v3400_v38 = vrot.slane %v3399_v37, 4 }
 0x209   :  { %v3401_v40 = vadd.f32 %v3400_v38, %v3399_v37 }
 0x20b   :  { %v3402_v41 = vrot.slane %v3401_v40, 2 }
 0x20d   :  { %v3403_v43 = vadd.f32 %v3402_v41, %v3401_v40 }
 0x20f   :  { %v3404_v45 = vrot.slane %v3403_v43, 1 }
 0x211   :  { %v3405_v46 = vadd.f32 %v3404_v45, %v3403_v43 }
 0x213   :  { %v3406_v47 = vmul.f32 %v3405_v46, %v5726_v31 }
 0x215   :  { %v3407_v48 = vadd.f32 1e-05, %v3406_v47 }
 0x217   :  { %5399 = vrsqrt.f32 %v3407_v48  ;;  %vm3414_vm3 = vweird.f32 %v3407_v48 }
 0x21d   :  { %v5400_v49 = vpop.eup %5399 }
 0x21e   :  { %v3409_v50 = vmul.f32 %v5400_v49, %v3407_v48  ;;  %vm3415_vm2 = vweird.f32 %v5400_v49 }
 0x21f   :  { %vm3416_vm4 = vmor %vm3414_vm3, %vm3415_vm2 }
 0x220   :  { %v3410_v51 = vmul.f32 %v5400_v49, %v3409_v50 }
 0x222   :  { %v3411_v52 = vmul.f32 0.5, %v3410_v51 }
 0x224   :  { %v3412_v53 = vsub.f32 1.5, %v3411_v52 }
 0x226   :  { %v3413_v54 = vmul.f32 %v5400_v49, %v3412_v53 }
 0x228   :  { %v3417_v56 = vsel %vm3416_vm4, %v5400_v49, %v3413_v54 }
 0x229   :  { %v3418_v57 = vmul.f32 %v3417_v56, %v3398_v35 }
 0x22b   :  { %v3422_v59 = vmul.f32 %v5390_v55, %v3418_v57  ;;  %v5378_v55 = vld [vmem:[%s5786_s10 + $0x8] sm:$0xff] }
 0x22c   :  { %3668 = vmatpush.bf16.msra.mxu3 %v5378_v55 }
 0x22d   :  { %v3426_v60 = vadd.f32 %v5391_v58, %v3422_v59  ;;  %v5377_v58 = vld [vmem:[%s5786_s10] sm:$0xff] }
 0x22f   :  { %v3427_v61 = vmax.f32 %v3426_v60, 0.0 }
 0x230   :  { %3669 = vmatpush.bf16.msra.mxu3 %v5377_v58 }
 0x231   :  { %v3428_v62 = vpack.c.bf16 %v3427_v61, %v3427_v61 }
 0x233   :  { %3501 = vmatmul.bf16.vlgmr.msra.gmra.mxu1 %v3428_v62 }
 0x2b0   :  { %v3502_v63 = vpop.f32.mrf.mxu1 }
 0x2b1   :  { %v3508_v0 = vsel %vm2829_vm0, %v3502_v63, 0.0 }
 0x2b2   :  { %v3509_v1 = vrot.slane %v3508_v0, 4 }
 0x2b4   :  { %v3510_v2 = vadd.f32 %v3509_v1, %v3508_v0 }
 0x2b6   :  { %v3511_v3 = vrot.slane %v3510_v2, 2 }
 0x2b8   :  { %v3512_v4 = vadd.f32 %v3511_v3, %v3510_v2  ;;  %v3504_v5 = vpop.f32.mrf.mxu1 }
 0x2ba   :  { %v3513_v6 = vrot.slane %v3512_v4, 1 }
 0x2bc   :  { %v3514_v7 = vadd.f32 %v3513_v6, %v3512_v4  ;;  %v5394_v4 = vld [vmem:[#allocation14] ss:$0 sm:$0xff] }
 0x2be   :  { %v3515_v8 = vmul.f32 %v3514_v7, %v5726_v31  ;;  %v5395_v7 = vld [vmem:[#allocation15] ss:$0 sm:$0xff] }
 0x2c0   :  { %v3516_v9 = vsub.f32 %v3502_v63, %v3515_v8 }
 0x2c2   :  { %v3517_v11 = vmul.f32 %v3516_v9, %v3516_v9 }
 0x2c4   :  { %v3518_v12 = vsel %vm2829_vm0, %v3517_v11, 0.0 }
 0x2c5   :  { %v3519_v13 = vrot.slane %v3518_v12, 4 }
 0x2c7   :  { %v3520_v15 = vadd.f32 %v3519_v13, %v3518_v12 }
 0x2c9   :  { %v3521_v16 = vrot.slane %v3520_v15, 2 }
 0x2cb   :  { %v3522_v18 = vadd.f32 %v3521_v16, %v3520_v15 }
 0x2cd   :  { %v3523_v19 = vrot.slane %v3522_v18, 1 }
 0x2cf   :  { %v3524_v21 = vadd.f32 %v3523_v19, %v3522_v18 }
 0x2d1   :  { %v3525_v22 = vmul.f32 %v3524_v21, %v5726_v31 }
 0x2d3   :  { %v3526_v23 = vadd.f32 1e-05, %v3525_v22 }
 0x2d5   :  { %5401 = vrsqrt.f32 %v3526_v23  ;;  %vm3533_vm6 = vweird.f32 %v3526_v23 }
 0x2db   :  { %v5402_v24 = vpop.eup %5401 }
 0x2dc   :  { %v3528_v25 = vmul.f32 %v5402_v24, %v3526_v23  ;;  %vm3534_vm5 = vweird.f32 %v5402_v24 }
 0x2dd   :  { %vm3535_vm7 = vmor %vm3533_vm6, %vm3534_vm5 }
 0x2de   :  { %v3529_v26 = vmul.f32 %v5402_v24, %v3528_v25 }
 0x2e0   :  { %v3530_v27 = vmul.f32 0.5, %v3529_v26 }
 0x2e2   :  { %v3531_v28 = vsub.f32 1.5, %v3530_v27 }
 0x2e4   :  { %v3532_v29 = vmul.f32 %v5402_v24, %v3531_v28 }
 0x2e6   :  { %v3536_v32 = vsel %vm3535_vm7, %v5402_v24, %v3532_v29 }
 0x2e7   :  { %v3537_v33 = vmul.f32 %v3536_v32, %v3516_v9 }
 0x2e9   :  { %v3541_v35 = vmul.f32 %v5392_v30, %v3537_v33 }
 0x2eb   :  { %v3545_v36 = vadd.f32 %v5393_v34, %v3541_v35 }
 0x2ed   :  { %v3546_v37 = vmax.f32 %v3545_v36, 0.0 }
 0x2ef   :  { %v3547_v38 = vpack.c.bf16 %v3546_v37, %v3546_v37 }
 0x2f1   :  { %5031 = vmatmul.msk.bf16.vlgmr.msra.gmra.mxu2 %vm2829_vm0, %v3547_v38 }
 0x374   :  { %v3592_v39 = vpop.f32.mrf.mxu2 }
 0x375   :  { %v3599_v40 = vsel %vm3598_vm8, %v3592_v39, 0.0 }
 0x376   :  { %v3600_v41 = vrot.slane %v3599_v40, 4 }
 0x378   :  { %v3601_v42 = vadd.f32 %v3600_v41, %v3599_v40 }
 0x37a   :  { %v3602_v43 = vrot.slane %v3601_v42, 2 }
 0x37c   :  { %v3603_v44 = vadd.f32 %v3602_v43, %v3601_v42  ;;  %v3594_v45 = vpop.f32.mrf.mxu2 }
 0x37e   :  { %v3604_v46 = vrot.slane %v3603_v44, 1 }
 0x380   :  { %v3605_v47 = vadd.f32 %v3604_v46, %v3603_v44 }
 0x382   :  { %v3606_v48 = vmul.f32 %v3605_v47, %v5726_v31 }
 0x384   :  { %v3607_v49 = vsub.f32 %v3592_v39, %v3606_v48 }
 0x386   :  { %v3608_v50 = vmul.f32 %v3607_v49, %v3607_v49 }
 0x388   :  { %v3609_v51 = vsel %vm3598_vm8, %v3608_v50, 0.0 }
 0x389   :  { %v3610_v52 = vrot.slane %v3609_v51, 4 }
 0x38b   :  { %v3611_v53 = vadd.f32 %v3610_v52, %v3609_v51 }
 0x38d   :  { %v3612_v54 = vrot.slane %v3611_v53, 2 }
 0x38f   :  { %v3613_v56 = vadd.f32 %v3612_v54, %v3611_v53 }
 0x391   :  { %v3614_v57 = vrot.slane %v3613_v56, 1 }
 0x393   :  { %v3615_v59 = vadd.f32 %v3614_v57, %v3613_v56 }
 0x395   :  { %v3616_v60 = vmul.f32 %v3615_v59, %v5726_v31  ;;  %v5396_v31 = vld [vmem:[#allocation3] ss:$0 sm:$0xff] }
 0x397   :  { %v3617_v61 = vadd.f32 1e-05, %v3616_v60 }
 0x399   :  { %5403 = vrsqrt.f32 %v3617_v61  ;;  %vm3624_vm10 = vweird.f32 %v3617_v61 }
 0x39f   :  { %v5404_v62 = vpop.eup %5403 }
 0x3a0   :  { %v3619_v63 = vmul.f32 %v5404_v62, %v3617_v61  ;;  %vm3625_vm9 = vweird.f32 %v5404_v62 }
 0x3a1   :  { %vm3626_vm11 = vmor %vm3624_vm10, %vm3625_vm9 }
 0x3a2   :  { %v3620_v0 = vmul.f32 %v5404_v62, %v3619_v63 }
 0x3a4   :  { %v3621_v1 = vmul.f32 0.5, %v3620_v0 }
 0x3a6   :  { %v3622_v2 = vsub.f32 1.5, %v3621_v1 }
 0x3a8   :  { %v3623_v3 = vmul.f32 %v5404_v62, %v3622_v2 }
 0x3aa   :  { %v3627_v5 = vsel %vm3626_vm11, %v5404_v62, %v3623_v3 }
 0x3ab   :  { %v3628_v6 = vmul.f32 %v3627_v5, %v3607_v49 }
 0x3ad   :  { %v3632_v8 = vmul.f32 %v5394_v4, %v3628_v6 }
 0x3af   :  { %v3636_v9 = vadd.f32 %v5395_v7, %v3632_v8 }
 0x3b1   :  { %v3637_v10 = vmax.f32 %v3636_v9, 0.0 }
 0x3b3   :  { %v3638_v11 = vpack.c.bf16 %v3637_v10, %v3637_v10 }
 0x3b5   :  { %5040 = vmatmul.msk.bf16.vlgmr.msra.gmra.mxu3 %vm3598_vm8, %v3638_v11 }
 0x438   :  { %v3671_v12 = vpop.f32.mrf.mxu3 }
 0x439   :  { %v3672_v13 = vadd.f32 %v5396_v31, %v3671_v12 }
 0x43b   :  { %3676 = vst.msk [vmem:[%s5788_s12] sm:$0xff] %vm3675_vm12, %v3672_v13 }
 0x440   :  { %v3673_v14 = vpop.f32.mrf.mxu3 }
 0x441   :  { %3681 = vsyncpa [#allocation5], 1 }
 0x442   :  { %3682 = vsyncpa [#allocation7], 1 }
 0x443   :  { %3683 = vsyncpa [#allocation10], 1 }
 0x444   :  { %3684 = vsyncpa [#allocation13], 1 }
 0x445   :  { %3685 = vsyncpa [#allocation16], 1 }

</bundles_post_ra>
